<compile_context>
chip_gen: v7x
topology: tpu7x:2x2x1
jax: 0.10.0
libtpu: 0.0.40
codegen_flags: <defaults>
</compile_context>

<pallas_src>
import jax
import jax.numpy as jnp
from jax.experimental import pallas as pl
from jax.experimental.pallas import tpu as pltpu


def _lstm_mlp_kernel(
    x_ref,      # (T*Bp, I)   time-major, padded batch; rows [t*Bp,(t+1)*Bp) = step t
    wih0_ref,   # (I, 4H)     bf16, g-gate columns pre-scaled by 2
    whh0_ref,   # (H, 4H)     bf16, g-gate columns pre-scaled by 2
    b0_ref,     # (1, 4H)     f32, combined bih+bhh (g entries pre-scaled by 2)
    wih1_ref,   # (H, 4H1)    bf16, g-gate columns pre-scaled by 2
    whh1_ref,   # (H1, 4H1)   bf16, g-gate columns pre-scaled by 2
    b1_ref,     # (1, 4H1)    f32, combined bih+bhh (g entries pre-scaled by 2)
    wc_ref,     # (H1, 4)     collapsed linear_0 @ linear_1 @ linear_2 weight (f32)
    bc_ref,     # (1, 4)      collapsed linear head bias (f32)
    out_ref,    # (Bp, 4)
):
    Bp = out_ref.shape[0]
    TB = x_ref.shape[0]
    T = TB // Bp
    H = whh0_ref.shape[0]
    H1 = whh1_ref.shape[0]

    whh0 = whh0_ref[...]
    wih1 = wih1_ref[...]
    whh1 = whh1_ref[...]
    b1 = b1_ref[...]

    # Hoisted layer-0 input projection: one bf16 MXU matmul covers all T steps.
    xw_all = (
        jnp.dot(x_ref[...].astype(jnp.bfloat16), wih0_ref[...],
                preferred_element_type=jnp.float32)
        + b0_ref[...]
    )  # (T*Bp, 4H) f32

    def lstm_cell(gates, c, hdim):
        # g-gate columns were pre-scaled by 2, so tanh(g) = 2*sigmoid(2g) - 1:
        # a single exp + one EUP reciprocal activates all four gates.
        s = pl.reciprocal(1.0 + jnp.exp(-gates), approx=True)
        i = s[:, 0 * hdim:1 * hdim]
        f = s[:, 1 * hdim:2 * hdim]
        g = 2.0 * s[:, 2 * hdim:3 * hdim] - 1.0
        o = s[:, 3 * hdim:4 * hdim]
        c_new = f * c + i * g
        h_new = o * jnp.tanh(c_new)
        return h_new, c_new

    z = lambda d: jnp.zeros((Bp, d), jnp.float32)
    h0, c0, h1, c1 = z(H), z(H), z(H1), z(H1)

    # Fully unrolled time loop (T is static); slices are sublane-aligned (Bp=8k).
    for t in range(T):
        # layer 0: recurrent matmul only (input projection precomputed above).
        gates0 = xw_all[t * Bp:(t + 1) * Bp, :] + jnp.dot(
            h0.astype(jnp.bfloat16), whh0, preferred_element_type=jnp.float32)
        h0, c0 = lstm_cell(gates0, c0, H)

        # layer 1: two independent dots, no per-timestep concat. The h1-recurrent
        # dot only depends on the previous iteration's h1, so it can be issued
        # under layer-0's cell math by the scheduler.
        gates1 = (
            jnp.dot(h0.astype(jnp.bfloat16), wih1,
                    preferred_element_type=jnp.float32)
            + jnp.dot(h1.astype(jnp.bfloat16), whh1,
                      preferred_element_type=jnp.float32)
            + b1
        )
        h1, c1 = lstm_cell(gates1, c1, H1)

    # Collapsed Linear head (dropout == identity in eval mode), then softmax
    # over the feature axis (PyTorch dim=1 of the (B, 4) output). The single
    # epilogue divide is kept exact (off the serial path, preserves sum-to-1).
    y = jnp.dot(h1, wc_ref[...], preferred_element_type=jnp.float32) + bc_ref[...]
    y = y - jnp.max(y, axis=-1, keepdims=True)
    e = jnp.exp(y)
    out_ref[...] = e / jnp.sum(e, axis=-1, keepdims=True)


def model_forward(x, params):
    """x: (B, T, input_size) float32 -> (B, 4) float32 softmax probabilities."""
    B, T, I = x.shape
    # Pad batch to the f32 sublane tile (8) so every per-step slice and every
    # matmul operand is vreg-aligned.
    Bp = max(8, ((B + 7) // 8) * 8)
    if Bp != B:
        x = jnp.pad(x, ((0, Bp - B), (0, 0), (0, 0)))
    # Time-major, flattened: timestep t is the sublane-aligned row block
    # [t*Bp, (t+1)*Bp).
    x2d = jnp.transpose(x, (1, 0, 2)).reshape(T * Bp, I)

    n_inputs = 1 + len(params)
    out = pl.pallas_call(
        _lstm_mlp_kernel,
        out_shape=jax.ShapeDtypeStruct((Bp, 4), jnp.float32),
        in_specs=[pl.BlockSpec(memory_space=pltpu.MemorySpace.VMEM)] * n_inputs,
        out_specs=pl.BlockSpec(memory_space=pltpu.MemorySpace.VMEM),
        compiler_params=pltpu.CompilerParams(
            # Allow XLA to fuse the pad/transpose/reshape producer of x2d into
            # the Pallas call (kernel is dominated by fixed launch/DMA overhead).
            allow_input_fusion=[True] + [False] * len(params),
        ),
    )(x2d, *params)
    return out[:B]


def init_params(key, input_size, hidden_size):
    """PyTorch-style uniform init, pre-transformed into the kernel layout:
       transposed weights, combined biases, g-gate 2x scaling, bf16 LSTM
       weights, and a collapsed linear head (dropout == identity in eval)."""
    H = hidden_size
    H1 = hidden_size // 4          # second nn.LSTM hidden size = hidden_size // 4
    keys = jax.random.split(key, 14)

    def u(k, shape, bound):
        return jax.random.uniform(k, shape, jnp.float32, -bound, bound)

    s0 = 1.0 / (H ** 0.5)
    wih0 = u(keys[0], (4 * H, input_size), s0)
    whh0 = u(keys[1], (4 * H, H), s0)
    bih0 = u(keys[2], (4 * H,), s0)
    bhh0 = u(keys[3], (4 * H,), s0)

    s1 = 1.0 / (H1 ** 0.5)
    wih1 = u(keys[4], (4 * H1, H), s1)
    whh1 = u(keys[5], (4 * H1, H1), s1)
    bih1 = u(keys[6], (4 * H1,), s1)
    bhh1 = u(keys[7], (4 * H1,), s1)

    sl0 = 1.0 / (H1 ** 0.5)
    wl0 = u(keys[8], (16, H1), sl0)
    bl0 = u(keys[9], (16,), sl0)
    sl1 = 1.0 / (16 ** 0.5)
    wl1 = u(keys[10], (8, 16), sl1)
    bl1 = u(keys[11], (8,), sl1)
    sl2 = 1.0 / (8 ** 0.5)
    wl2 = u(keys[12], (4, 8), sl2)
    bl2 = u(keys[13], (4,), sl2)

    def gscale_vec(hdim):
        # [i, f, g, o] gate blocks; g block scaled by 2 (tanh-via-sigmoid trick).
        return jnp.concatenate([
            jnp.ones((2 * hdim,), jnp.float32),
            jnp.full((hdim,), 2.0, jnp.float32),
            jnp.ones((hdim,), jnp.float32),
        ])

    g0 = gscale_vec(H)
    g1 = gscale_vec(H1)

    # LSTM layer 0 (transposed to (in, 4H), g columns scaled, bf16 for the MXU).
    wih0_t = (wih0.T * g0[None, :]).astype(jnp.bfloat16)
    whh0_t = (whh0.T * g0[None, :]).astype(jnp.bfloat16)
    b0 = (bih0 + bhh0) * g0

    # LSTM layer 1: two separate pre-transposed weights (no stacking/concat).
    wih1_t = (wih1.T * g1[None, :]).astype(jnp.bfloat16)
    whh1_t = (whh1.T * g1[None, :]).astype(jnp.bfloat16)
    b1 = (bih1 + bhh1) * g1

    # Collapse the activation-free linear head (dropout == identity in eval).
    wc = wl0.T @ wl1.T @ wl2.T                      # (H1, 4)
    bc = (bl0 @ wl1.T + bl1) @ wl2.T + bl2          # (4,)

    return [
        wih0_t, whh0_t, b0[None, :],   # lstm_0
        wih1_t, whh1_t, b1[None, :],   # lstm_1 (split dots)
        wc, bc[None, :],               # collapsed linear_0/1/2
    ]


if __name__ == "__main__":
    # Small shapes consistent with the module: batch=2, seq=8, input_size=16, hidden_size=32.
    B, T, INPUT_SIZE, HIDDEN_SIZE = 2, 8, 16, 32

    key = jax.random.PRNGKey(0)
    kx, kp = jax.random.split(key)
    x = jax.random.normal(kx, (B, T, INPUT_SIZE), jnp.float32)
    params = init_params(kp, INPUT_SIZE, HIDDEN_SIZE)

    # TODO(synk): nn.Dropout(0.5) in train mode is stochastic; implemented as identity (eval mode).
    fwd = jax.jit(model_forward)
    out = fwd(x, params)
    jax.block_until_ready(out)

    assert out.shape == (B, 4)
    assert bool(jnp.all(jnp.isfinite(out)))
    # rows of a softmax sum to 1 (exact divide kept in the epilogue)
    assert bool(jnp.allclose(jnp.sum(out, axis=1), 1.0, atol=1e-4))
    print("KERNEL_OK")
</pallas_src>

<mosaic_0001>
module attributes {stable_mosaic.version = 11 : i64} {
  func.func @_lstm_mlp_kernel(%arg0: memref<64x16xf32, #tpu.memory_space<vmem>>, %arg1: memref<16x128xbf16, #tpu.memory_space<vmem>>, %arg2: memref<32x128xbf16, #tpu.memory_space<vmem>>, %arg3: memref<1x128xf32, #tpu.memory_space<vmem>>, %arg4: memref<32x32xbf16, #tpu.memory_space<vmem>>, %arg5: memref<8x32xbf16, #tpu.memory_space<vmem>>, %arg6: memref<1x32xf32, #tpu.memory_space<vmem>>, %arg7: memref<8x4xf32, #tpu.memory_space<vmem>>, %arg8: memref<1x4xf32, #tpu.memory_space<vmem>>, %arg9: memref<8x4xf32, #tpu.memory_space<vmem>>) attributes {dimension_semantics = [], scalar_prefetch = 0 : i64, scratch_operands = 0 : i64, tpu.core_type = #tpu.core_type<tc>} {
    %c0 = arith.constant 0 : index
    %c0_0 = arith.constant 0 : index
    %0 = vector.load %arg2[%c0, %c0_0] : memref<32x128xbf16, #tpu.memory_space<vmem>>, vector<32x128xbf16>
    %c0_1 = arith.constant 0 : index
    %c0_2 = arith.constant 0 : index
    %1 = vector.load %arg4[%c0_1, %c0_2] : memref<32x32xbf16, #tpu.memory_space<vmem>>, vector<32x32xbf16>
    %c0_3 = arith.constant 0 : index
    %c0_4 = arith.constant 0 : index
    %2 = vector.load %arg5[%c0_3, %c0_4] : memref<8x32xbf16, #tpu.memory_space<vmem>>, vector<8x32xbf16>
    %c0_5 = arith.constant 0 : index
    %c0_6 = arith.constant 0 : index
    %3 = vector.load %arg6[%c0_5, %c0_6] : memref<1x32xf32, #tpu.memory_space<vmem>>, vector<1x32xf32>
    %c0_7 = arith.constant 0 : index
    %c0_8 = arith.constant 0 : index
    %4 = vector.load %arg0[%c0_7, %c0_8] : memref<64x16xf32, #tpu.memory_space<vmem>>, vector<64x16xf32>
    %5 = arith.truncf %4 : vector<64x16xf32> to vector<64x16xbf16>
    %c0_9 = arith.constant 0 : index
    %c0_10 = arith.constant 0 : index
    %6 = vector.load %arg1[%c0_9, %c0_10] : memref<16x128xbf16, #tpu.memory_space<vmem>>, vector<16x128xbf16>
    %cst = arith.constant dense<0.000000e+00> : vector<64x128xf32>
    %7 = tpu.matmul %5, %6, %cst {dimension_numbers = #tpu.dot_dimension_numbers<[1], [0], [0], [1], [0, 0, 1, 1], [], []>} : vector<64x16xbf16>, vector<16x128xbf16>, vector<64x128xf32> -> vector<64x128xf32>
    %c0_11 = arith.constant 0 : index
    %c0_12 = arith.constant 0 : index
    %8 = vector.load %arg3[%c0_11, %c0_12] : memref<1x128xf32, #tpu.memory_space<vmem>>, vector<1x128xf32>
    %9 = vector.broadcast %8 : vector<1x128xf32> to vector<64x128xf32>
    %10 = arith.addf %7, %9 : vector<64x128xf32>
    %cst_13 = arith.constant 0.000000e+00 : f32
    %11 = vector.broadcast %cst_13 : f32 to vector<8x32xf32>
    %cst_14 = arith.constant 0.000000e+00 : f32
    %12 = vector.broadcast %cst_14 : f32 to vector<8x32xf32>
    %cst_15 = arith.constant 0.000000e+00 : f32
    %13 = vector.broadcast %cst_15 : f32 to vector<8x8xf32>
    %cst_16 = arith.constant 0.000000e+00 : f32
    %14 = vector.broadcast %cst_16 : f32 to vector<8x8xf32>
    %15 = vector.extract_strided_slice %10 {offsets = [0, 0], sizes = [8, 128], strides = [1, 1]} : vector<64x128xf32> to vector<8x128xf32>
    %16 = arith.truncf %11 : vector<8x32xf32> to vector<8x32xbf16>
    %cst_17 = arith.constant dense<0.000000e+00> : vector<8x128xf32>
    %17 = tpu.matmul %16, %0, %cst_17 {dimension_numbers = #tpu.dot_dimension_numbers<[1], [0], [0], [1], [0, 0, 1, 1], [], []>} : vector<8x32xbf16>, vector<32x128xbf16>, vector<8x128xf32> -> vector<8x128xf32>
    %18 = arith.addf %15, %17 : vector<8x128xf32>
    %cst_18 = arith.constant 0.000000e+00 : f32
    %19 = vector.broadcast %cst_18 : f32 to vector<8x128xf32>
    %20 = arith.subf %19, %18 : vector<8x128xf32>
    %21 = math.exp %20 : vector<8x128xf32>
    %cst_19 = arith.constant 1.000000e+00 : f32
    %22 = vector.broadcast %cst_19 : f32 to vector<8x128xf32>
    %23 = arith.addf %22, %21 : vector<8x128xf32>
    %24 = tpu.reciprocal %23 {approx = true} : vector<8x128xf32> -> vector<8x128xf32>
    %25 = vector.extract_strided_slice %24 {offsets = [0, 0], sizes = [8, 32], strides = [1, 1]} : vector<8x128xf32> to vector<8x32xf32>
    %26 = vector.extract_strided_slice %24 {offsets = [0, 32], sizes = [8, 32], strides = [1, 1]} : vector<8x128xf32> to vector<8x32xf32>
    %27 = vector.extract_strided_slice %24 {offsets = [0, 64], sizes = [8, 32], strides = [1, 1]} : vector<8x128xf32> to vector<8x32xf32>
    %cst_20 = arith.constant 2.000000e+00 : f32
    %28 = vector.broadcast %cst_20 : f32 to vector<8x32xf32>
    %29 = arith.mulf %28, %27 : vector<8x32xf32>
    %cst_21 = arith.constant 1.000000e+00 : f32
    %30 = vector.broadcast %cst_21 : f32 to vector<8x32xf32>
    %31 = arith.subf %29, %30 : vector<8x32xf32>
    %32 = vector.extract_strided_slice %24 {offsets = [0, 96], sizes = [8, 32], strides = [1, 1]} : vector<8x128xf32> to vector<8x32xf32>
    %33 = arith.mulf %26, %12 : vector<8x32xf32>
    %34 = arith.mulf %25, %31 : vector<8x32xf32>
    %35 = arith.addf %33, %34 : vector<8x32xf32>
    %36 = math.tanh %35 : vector<8x32xf32>
    %37 = arith.mulf %32, %36 : vector<8x32xf32>
    %38 = arith.truncf %37 : vector<8x32xf32> to vector<8x32xbf16>
    %cst_22 = arith.constant dense<0.000000e+00> : vector<8x32xf32>
    %39 = tpu.matmul %38, %1, %cst_22 {dimension_numbers = #tpu.dot_dimension_numbers<[1], [0], [0], [1], [0, 0, 1, 1], [], []>} : vector<8x32xbf16>, vector<32x32xbf16>, vector<8x32xf32> -> vector<8x32xf32>
    %40 = arith.truncf %13 : vector<8x8xf32> to vector<8x8xbf16>
    %cst_23 = arith.constant dense<0.000000e+00> : vector<8x32xf32>
    %41 = tpu.matmul %40, %2, %cst_23 {dimension_numbers = #tpu.dot_dimension_numbers<[1], [0], [0], [1], [0, 0, 1, 1], [], []>} : vector<8x8xbf16>, vector<8x32xbf16>, vector<8x32xf32> -> vector<8x32xf32>
    %42 = arith.addf %39, %41 : vector<8x32xf32>
    %43 = vector.broadcast %3 : vector<1x32xf32> to vector<8x32xf32>
    %44 = arith.addf %42, %43 : vector<8x32xf32>
    %cst_24 = arith.constant 0.000000e+00 : f32
    %45 = vector.broadcast %cst_24 : f32 to vector<8x32xf32>
    %46 = arith.subf %45, %44 : vector<8x32xf32>
    %47 = math.exp %46 : vector<8x32xf32>
    %cst_25 = arith.constant 1.000000e+00 : f32
    %48 = vector.broadcast %cst_25 : f32 to vector<8x32xf32>
    %49 = arith.addf %48, %47 : vector<8x32xf32>
    %50 = tpu.reciprocal %49 {approx = true} : vector<8x32xf32> -> vector<8x32xf32>
    %51 = vector.extract_strided_slice %50 {offsets = [0, 0], sizes = [8, 8], strides = [1, 1]} : vector<8x32xf32> to vector<8x8xf32>
    %52 = vector.extract_strided_slice %50 {offsets = [0, 8], sizes = [8, 8], strides = [1, 1]} : vector<8x32xf32> to vector<8x8xf32>
    %53 = vector.extract_strided_slice %50 {offsets = [0, 16], sizes = [8, 8], strides = [1, 1]} : vector<8x32xf32> to vector<8x8xf32>
    %cst_26 = arith.constant 2.000000e+00 : f32
    %54 = vector.broadcast %cst_26 : f32 to vector<8x8xf32>
    %55 = arith.mulf %54, %53 : vector<8x8xf32>
    %cst_27 = arith.constant 1.000000e+00 : f32
    %56 = vector.broadcast %cst_27 : f32 to vector<8x8xf32>
    %57 = arith.subf %55, %56 : vector<8x8xf32>
    %58 = vector.extract_strided_slice %50 {offsets = [0, 24], sizes = [8, 8], strides = [1, 1]} : vector<8x32xf32> to vector<8x8xf32>
    %59 = arith.mulf %52, %14 : vector<8x8xf32>
    %60 = arith.mulf %51, %57 : vector<8x8xf32>
    %61 = arith.addf %59, %60 : vector<8x8xf32>
    %62 = math.tanh %61 : vector<8x8xf32>
    %63 = arith.mulf %58, %62 : vector<8x8xf32>
    %64 = vector.extract_strided_slice %10 {offsets = [8, 0], sizes = [8, 128], strides = [1, 1]} : vector<64x128xf32> to vector<8x128xf32>
    %65 = arith.truncf %37 : vector<8x32xf32> to vector<8x32xbf16>
    %cst_28 = arith.constant dense<0.000000e+00> : vector<8x128xf32>
    %66 = tpu.matmul %65, %0, %cst_28 {dimension_numbers = #tpu.dot_dimension_numbers<[1], [0], [0], [1], [0, 0, 1, 1], [], []>} : vector<8x32xbf16>, vector<32x128xbf16>, vector<8x128xf32> -> vector<8x128xf32>
    %67 = arith.addf %64, %66 : vector<8x128xf32>
    %cst_29 = arith.constant 0.000000e+00 : f32
    %68 = vector.broadcast %cst_29 : f32 to vector<8x128xf32>
    %69 = arith.subf %68, %67 : vector<8x128xf32>
    %70 = math.exp %69 : vector<8x128xf32>
    %cst_30 = arith.constant 1.000000e+00 : f32
    %71 = vector.broadcast %cst_30 : f32 to vector<8x128xf32>
    %72 = arith.addf %71, %70 : vector<8x128xf32>
    %73 = tpu.reciprocal %72 {approx = true} : vector<8x128xf32> -> vector<8x128xf32>
    %74 = vector.extract_strided_slice %73 {offsets = [0, 0], sizes = [8, 32], strides = [1, 1]} : vector<8x128xf32> to vector<8x32xf32>
    %75 = vector.extract_strided_slice %73 {offsets = [0, 32], sizes = [8, 32], strides = [1, 1]} : vector<8x128xf32> to vector<8x32xf32>
    %76 = vector.extract_strided_slice %73 {offsets = [0, 64], sizes = [8, 32], strides = [1, 1]} : vector<8x128xf32> to vector<8x32xf32>
    %cst_31 = arith.constant 2.000000e+00 : f32
    %77 = vector.broadcast %cst_31 : f32 to vector<8x32xf32>
    %78 = arith.mulf %77, %76 : vector<8x32xf32>
    %cst_32 = arith.constant 1.000000e+00 : f32
    %79 = vector.broadcast %cst_32 : f32 to vector<8x32xf32>
    %80 = arith.subf %78, %79 : vector<8x32xf32>
    %81 = vector.extract_strided_slice %73 {offsets = [0, 96], sizes = [8, 32], strides = [1, 1]} : vector<8x128xf32> to vector<8x32xf32>
    %82 = arith.mulf %75, %35 : vector<8x32xf32>
    %83 = arith.mulf %74, %80 : vector<8x32xf32>
    %84 = arith.addf %82, %83 : vector<8x32xf32>
    %85 = math.tanh %84 : vector<8x32xf32>
    %86 = arith.mulf %81, %85 : vector<8x32xf32>
    %87 = arith.truncf %86 : vector<8x32xf32> to vector<8x32xbf16>
    %cst_33 = arith.constant dense<0.000000e+00> : vector<8x32xf32>
    %88 = tpu.matmul %87, %1, %cst_33 {dimension_numbers = #tpu.dot_dimension_numbers<[1], [0], [0], [1], [0, 0, 1, 1], [], []>} : vector<8x32xbf16>, vector<32x32xbf16>, vector<8x32xf32> -> vector<8x32xf32>
    %89 = arith.truncf %63 : vector<8x8xf32> to vector<8x8xbf16>
    %cst_34 = arith.constant dense<0.000000e+00> : vector<8x32xf32>
    %90 = tpu.matmul %89, %2, %cst_34 {dimension_numbers = #tpu.dot_dimension_numbers<[1], [0], [0], [1], [0, 0, 1, 1], [], []>} : vector<8x8xbf16>, vector<8x32xbf16>, vector<8x32xf32> -> vector<8x32xf32>
    %91 = arith.addf %88, %90 : vector<8x32xf32>
    %92 = vector.broadcast %3 : vector<1x32xf32> to vector<8x32xf32>
    %93 = arith.addf %91, %92 : vector<8x32xf32>
    %cst_35 = arith.constant 0.000000e+00 : f32
    %94 = vector.broadcast %cst_35 : f32 to vector<8x32xf32>
    %95 = arith.subf %94, %93 : vector<8x32xf32>
    %96 = math.exp %95 : vector<8x32xf32>
    %cst_36 = arith.constant 1.000000e+00 : f32
    %97 = vector.broadcast %cst_36 : f32 to vector<8x32xf32>
    %98 = arith.addf %97, %96 : vector<8x32xf32>
    %99 = tpu.reciprocal %98 {approx = true} : vector<8x32xf32> -> vector<8x32xf32>
    %100 = vector.extract_strided_slice %99 {offsets = [0, 0], sizes = [8, 8], strides = [1, 1]} : vector<8x32xf32> to vector<8x8xf32>
    %101 = vector.extract_strided_slice %99 {offsets = [0, 8], sizes = [8, 8], strides = [1, 1]} : vector<8x32xf32> to vector<8x8xf32>
    %102 = vector.extract_strided_slice %99 {offsets = [0, 16], sizes = [8, 8], strides = [1, 1]} : vector<8x32xf32> to vector<8x8xf32>
    %cst_37 = arith.constant 2.000000e+00 : f32
    %103 = vector.broadcast %cst_37 : f32 to vector<8x8xf32>
    %104 = arith.mulf %103, %102 : vector<8x8xf32>
    %cst_38 = arith.constant 1.000000e+00 : f32
    %105 = vector.broadcast %cst_38 : f32 to vector<8x8xf32>
    %106 = arith.subf %104, %105 : vector<8x8xf32>
    %107 = vector.extract_strided_slice %99 {offsets = [0, 24], sizes = [8, 8], strides = [1, 1]} : vector<8x32xf32> to vector<8x8xf32>
    %108 = arith.mulf %101, %61 : vector<8x8xf32>
    %109 = arith.mulf %100, %106 : vector<8x8xf32>
    %110 = arith.addf %108, %109 : vector<8x8xf32>
    %111 = math.tanh %110 : vector<8x8xf32>
    %112 = arith.mulf %107, %111 : vector<8x8xf32>
    %113 = vector.extract_strided_slice %10 {offsets = [16, 0], sizes = [8, 128], strides = [1, 1]} : vector<64x128xf32> to vector<8x128xf32>
    %114 = arith.truncf %86 : vector<8x32xf32> to vector<8x32xbf16>
    %cst_39 = arith.constant dense<0.000000e+00> : vector<8x128xf32>
    %115 = tpu.matmul %114, %0, %cst_39 {dimension_numbers = #tpu.dot_dimension_numbers<[1], [0], [0], [1], [0, 0, 1, 1], [], []>} : vector<8x32xbf16>, vector<32x128xbf16>, vector<8x128xf32> -> vector<8x128xf32>
    %116 = arith.addf %113, %115 : vector<8x128xf32>
    %cst_40 = arith.constant 0.000000e+00 : f32
    %117 = vector.broadcast %cst_40 : f32 to vector<8x128xf32>
    %118 = arith.subf %117, %116 : vector<8x128xf32>
    %119 = math.exp %118 : vector<8x128xf32>
    %cst_41 = arith.constant 1.000000e+00 : f32
    %120 = vector.broadcast %cst_41 : f32 to vector<8x128xf32>
    %121 = arith.addf %120, %119 : vector<8x128xf32>
    %122 = tpu.reciprocal %121 {approx = true} : vector<8x128xf32> -> vector<8x128xf32>
    %123 = vector.extract_strided_slice %122 {offsets = [0, 0], sizes = [8, 32], strides = [1, 1]} : vector<8x128xf32> to vector<8x32xf32>
    %124 = vector.extract_strided_slice %122 {offsets = [0, 32], sizes = [8, 32], strides = [1, 1]} : vector<8x128xf32> to vector<8x32xf32>
    %125 = vector.extract_strided_slice %122 {offsets = [0, 64], sizes = [8, 32], strides = [1, 1]} : vector<8x128xf32> to vector<8x32xf32>
    %cst_42 = arith.constant 2.000000e+00 : f32
    %126 = vector.broadcast %cst_42 : f32 to vector<8x32xf32>
    %127 = arith.mulf %126, %125 : vector<8x32xf32>
    %cst_43 = arith.constant 1.000000e+00 : f32
    %128 = vector.broadcast %cst_43 : f32 to vector<8x32xf32>
    %129 = arith.subf %127, %128 : vector<8x32xf32>
    %130 = vector.extract_strided_slice %122 {offsets = [0, 96], sizes = [8, 32], strides = [1, 1]} : vector<8x128xf32> to vector<8x32xf32>
    %131 = arith.mulf %124, %84 : vector<8x32xf32>
    %132 = arith.mulf %123, %129 : vector<8x32xf32>
    %133 = arith.addf %131, %132 : vector<8x32xf32>
    %134 = math.tanh %133 : vector<8x32xf32>
    %135 = arith.mulf %130, %134 : vector<8x32xf32>
    %136 = arith.truncf %135 : vector<8x32xf32> to vector<8x32xbf16>
    %cst_44 = arith.constant dense<0.000000e+00> : vector<8x32xf32>
    %137 = tpu.matmul %136, %1, %cst_44 {dimension_numbers = #tpu.dot_dimension_numbers<[1], [0], [0], [1], [0, 0, 1, 1], [], []>} : vector<8x32xbf16>, vector<32x32xbf16>, vector<8x32xf32> -> vector<8x32xf32>
    %138 = arith.truncf %112 : vector<8x8xf32> to vector<8x8xbf16>
    %cst_45 = arith.constant dense<0.000000e+00> : vector<8x32xf32>
    %139 = tpu.matmul %138, %2, %cst_45 {dimension_numbers = #tpu.dot_dimension_numbers<[1], [0], [0], [1], [0, 0, 1, 1], [], []>} : vector<8x8xbf16>, vector<8x32xbf16>, vector<8x32xf32> -> vector<8x32xf32>
    %140 = arith.addf %137, %139 : vector<8x32xf32>
    %141 = vector.broadcast %3 : vector<1x32xf32> to vector<8x32xf32>
    %142 = arith.addf %140, %141 : vector<8x32xf32>
    %cst_46 = arith.constant 0.000000e+00 : f32
    %143 = vector.broadcast %cst_46 : f32 to vector<8x32xf32>
    %144 = arith.subf %143, %142 : vector<8x32xf32>
    %145 = math.exp %144 : vector<8x32xf32>
    %cst_47 = arith.constant 1.000000e+00 : f32
    %146 = vector.broadcast %cst_47 : f32 to vector<8x32xf32>
    %147 = arith.addf %146, %145 : vector<8x32xf32>
    %148 = tpu.reciprocal %147 {approx = true} : vector<8x32xf32> -> vector<8x32xf32>
    %149 = vector.extract_strided_slice %148 {offsets = [0, 0], sizes = [8, 8], strides = [1, 1]} : vector<8x32xf32> to vector<8x8xf32>
    %150 = vector.extract_strided_slice %148 {offsets = [0, 8], sizes = [8, 8], strides = [1, 1]} : vector<8x32xf32> to vector<8x8xf32>
    %151 = vector.extract_strided_slice %148 {offsets = [0, 16], sizes = [8, 8], strides = [1, 1]} : vector<8x32xf32> to vector<8x8xf32>
    %cst_48 = arith.constant 2.000000e+00 : f32
    %152 = vector.broadcast %cst_48 : f32 to vector<8x8xf32>
    %153 = arith.mulf %152, %151 : vector<8x8xf32>
    %cst_49 = arith.constant 1.000000e+00 : f32
    %154 = vector.broadcast %cst_49 : f32 to vector<8x8xf32>
    %155 = arith.subf %153, %154 : vector<8x8xf32>
    %156 = vector.extract_strided_slice %148 {offsets = [0, 24], sizes = [8, 8], strides = [1, 1]} : vector<8x32xf32> to vector<8x8xf32>
    %157 = arith.mulf %150, %110 : vector<8x8xf32>
    %158 = arith.mulf %149, %155 : vector<8x8xf32>
    %159 = arith.addf %157, %158 : vector<8x8xf32>
    %160 = math.tanh %159 : vector<8x8xf32>
    %161 = arith.mulf %156, %160 : vector<8x8xf32>
    %162 = vector.extract_strided_slice %10 {offsets = [24, 0], sizes = [8, 128], strides = [1, 1]} : vector<64x128xf32> to vector<8x128xf32>
    %163 = arith.truncf %135 : vector<8x32xf32> to vector<8x32xbf16>
    %cst_50 = arith.constant dense<0.000000e+00> : vector<8x128xf32>
    %164 = tpu.matmul %163, %0, %cst_50 {dimension_numbers = #tpu.dot_dimension_numbers<[1], [0], [0], [1], [0, 0, 1, 1], [], []>} : vector<8x32xbf16>, vector<32x128xbf16>, vector<8x128xf32> -> vector<8x128xf32>
    %165 = arith.addf %162, %164 : vector<8x128xf32>
    %cst_51 = arith.constant 0.000000e+00 : f32
    %166 = vector.broadcast %cst_51 : f32 to vector<8x128xf32>
    %167 = arith.subf %166, %165 : vector<8x128xf32>
    %168 = math.exp %167 : vector<8x128xf32>
    %cst_52 = arith.constant 1.000000e+00 : f32
    %169 = vector.broadcast %cst_52 : f32 to vector<8x128xf32>
    %170 = arith.addf %169, %168 : vector<8x128xf32>
    %171 = tpu.reciprocal %170 {approx = true} : vector<8x128xf32> -> vector<8x128xf32>
    %172 = vector.extract_strided_slice %171 {offsets = [0, 0], sizes = [8, 32], strides = [1, 1]} : vector<8x128xf32> to vector<8x32xf32>
    %173 = vector.extract_strided_slice %171 {offsets = [0, 32], sizes = [8, 32], strides = [1, 1]} : vector<8x128xf32> to vector<8x32xf32>
    %174 = vector.extract_strided_slice %171 {offsets = [0, 64], sizes = [8, 32], strides = [1, 1]} : vector<8x128xf32> to vector<8x32xf32>
    %cst_53 = arith.constant 2.000000e+00 : f32
    %175 = vector.broadcast %cst_53 : f32 to vector<8x32xf32>
    %176 = arith.mulf %175, %174 : vector<8x32xf32>
    %cst_54 = arith.constant 1.000000e+00 : f32
    %177 = vector.broadcast %cst_54 : f32 to vector<8x32xf32>
    %178 = arith.subf %176, %177 : vector<8x32xf32>
    %179 = vector.extract_strided_slice %171 {offsets = [0, 96], sizes = [8, 32], strides = [1, 1]} : vector<8x128xf32> to vector<8x32xf32>
    %180 = arith.mulf %173, %133 : vector<8x32xf32>
    %181 = arith.mulf %172, %178 : vector<8x32xf32>
    %182 = arith.addf %180, %181 : vector<8x32xf32>
    %183 = math.tanh %182 : vector<8x32xf32>
    %184 = arith.mulf %179, %183 : vector<8x32xf32>
    %185 = arith.truncf %184 : vector<8x32xf32> to vector<8x32xbf16>
    %cst_55 = arith.constant dense<0.000000e+00> : vector<8x32xf32>
    %186 = tpu.matmul %185, %1, %cst_55 {dimension_numbers = #tpu.dot_dimension_numbers<[1], [0], [0], [1], [0, 0, 1, 1], [], []>} : vector<8x32xbf16>, vector<32x32xbf16>, vector<8x32xf32> -> vector<8x32xf32>
    %187 = arith.truncf %161 : vector<8x8xf32> to vector<8x8xbf16>
    %cst_56 = arith.constant dense<0.000000e+00> : vector<8x32xf32>
    %188 = tpu.matmul %187, %2, %cst_56 {dimension_numbers = #tpu.dot_dimension_numbers<[1], [0], [0], [1], [0, 0, 1, 1], [], []>} : vector<8x8xbf16>, vector<8x32xbf16>, vector<8x32xf32> -> vector<8x32xf32>
    %189 = arith.addf %186, %188 : vector<8x32xf32>
    %190 = vector.broadcast %3 : vector<1x32xf32> to vector<8x32xf32>
    %191 = arith.addf %189, %190 : vector<8x32xf32>
    %cst_57 = arith.constant 0.000000e+00 : f32
    %192 = vector.broadcast %cst_57 : f32 to vector<8x32xf32>
    %193 = arith.subf %192, %191 : vector<8x32xf32>
    %194 = math.exp %193 : vector<8x32xf32>
    %cst_58 = arith.constant 1.000000e+00 : f32
    %195 = vector.broadcast %cst_58 : f32 to vector<8x32xf32>
    %196 = arith.addf %195, %194 : vector<8x32xf32>
    %197 = tpu.reciprocal %196 {approx = true} : vector<8x32xf32> -> vector<8x32xf32>
    %198 = vector.extract_strided_slice %197 {offsets = [0, 0], sizes = [8, 8], strides = [1, 1]} : vector<8x32xf32> to vector<8x8xf32>
    %199 = vector.extract_strided_slice %197 {offsets = [0, 8], sizes = [8, 8], strides = [1, 1]} : vector<8x32xf32> to vector<8x8xf32>
    %200 = vector.extract_strided_slice %197 {offsets = [0, 16], sizes = [8, 8], strides = [1, 1]} : vector<8x32xf32> to vector<8x8xf32>
    %cst_59 = arith.constant 2.000000e+00 : f32
    %201 = vector.broadcast %cst_59 : f32 to vector<8x8xf32>
    %202 = arith.mulf %201, %200 : vector<8x8xf32>
    %cst_60 = arith.constant 1.000000e+00 : f32
    %203 = vector.broadcast %cst_60 : f32 to vector<8x8xf32>
    %204 = arith.subf %202, %203 : vector<8x8xf32>
    %205 = vector.extract_strided_slice %197 {offsets = [0, 24], sizes = [8, 8], strides = [1, 1]} : vector<8x32xf32> to vector<8x8xf32>
    %206 = arith.mulf %199, %159 : vector<8x8xf32>
    %207 = arith.mulf %198, %204 : vector<8x8xf32>
    %208 = arith.addf %206, %207 : vector<8x8xf32>
    %209 = math.tanh %208 : vector<8x8xf32>
    %210 = arith.mulf %205, %209 : vector<8x8xf32>
    %211 = vector.extract_strided_slice %10 {offsets = [32, 0], sizes = [8, 128], strides = [1, 1]} : vector<64x128xf32> to vector<8x128xf32>
    %212 = arith.truncf %184 : vector<8x32xf32> to vector<8x32xbf16>
    %cst_61 = arith.constant dense<0.000000e+00> : vector<8x128xf32>
    %213 = tpu.matmul %212, %0, %cst_61 {dimension_numbers = #tpu.dot_dimension_numbers<[1], [0], [0], [1], [0, 0, 1, 1], [], []>} : vector<8x32xbf16>, vector<32x128xbf16>, vector<8x128xf32> -> vector<8x128xf32>
    %214 = arith.addf %211, %213 : vector<8x128xf32>
    %cst_62 = arith.constant 0.000000e+00 : f32
    %215 = vector.broadcast %cst_62 : f32 to vector<8x128xf32>
    %216 = arith.subf %215, %214 : vector<8x128xf32>
    %217 = math.exp %216 : vector<8x128xf32>
    %cst_63 = arith.constant 1.000000e+00 : f32
    %218 = vector.broadcast %cst_63 : f32 to vector<8x128xf32>
    %219 = arith.addf %218, %217 : vector<8x128xf32>
    %220 = tpu.reciprocal %219 {approx = true} : vector<8x128xf32> -> vector<8x128xf32>
    %221 = vector.extract_strided_slice %220 {offsets = [0, 0], sizes = [8, 32], strides = [1, 1]} : vector<8x128xf32> to vector<8x32xf32>
    %222 = vector.extract_strided_slice %220 {offsets = [0, 32], sizes = [8, 32], strides = [1, 1]} : vector<8x128xf32> to vector<8x32xf32>
    %223 = vector.extract_strided_slice %220 {offsets = [0, 64], sizes = [8, 32], strides = [1, 1]} : vector<8x128xf32> to vector<8x32xf32>
    %cst_64 = arith.constant 2.000000e+00 : f32
    %224 = vector.broadcast %cst_64 : f32 to vector<8x32xf32>
    %225 = arith.mulf %224, %223 : vector<8x32xf32>
    %cst_65 = arith.constant 1.000000e+00 : f32
    %226 = vector.broadcast %cst_65 : f32 to vector<8x32xf32>
    %227 = arith.subf %225, %226 : vector<8x32xf32>
    %228 = vector.extract_strided_slice %220 {offsets = [0, 96], sizes = [8, 32], strides = [1, 1]} : vector<8x128xf32> to vector<8x32xf32>
    %229 = arith.mulf %222, %182 : vector<8x32xf32>
    %230 = arith.mulf %221, %227 : vector<8x32xf32>
    %231 = arith.addf %229, %230 : vector<8x32xf32>
    %232 = math.tanh %231 : vector<8x32xf32>
    %233 = arith.mulf %228, %232 : vector<8x32xf32>
    %234 = arith.truncf %233 : vector<8x32xf32> to vector<8x32xbf16>
    %cst_66 = arith.constant dense<0.000000e+00> : vector<8x32xf32>
    %235 = tpu.matmul %234, %1, %cst_66 {dimension_numbers = #tpu.dot_dimension_numbers<[1], [0], [0], [1], [0, 0, 1, 1], [], []>} : vector<8x32xbf16>, vector<32x32xbf16>, vector<8x32xf32> -> vector<8x32xf32>
    %236 = arith.truncf %210 : vector<8x8xf32> to vector<8x8xbf16>
    %cst_67 = arith.constant dense<0.000000e+00> : vector<8x32xf32>
    %237 = tpu.matmul %236, %2, %cst_67 {dimension_numbers = #tpu.dot_dimension_numbers<[1], [0], [0], [1], [0, 0, 1, 1], [], []>} : vector<8x8xbf16>, vector<8x32xbf16>, vector<8x32xf32> -> vector<8x32xf32>
    %238 = arith.addf %235, %237 : vector<8x32xf32>
    %239 = vector.broadcast %3 : vector<1x32xf32> to vector<8x32xf32>
    %240 = arith.addf %238, %239 : vector<8x32xf32>
    %cst_68 = arith.constant 0.000000e+00 : f32
    %241 = vector.broadcast %cst_68 : f32 to vector<8x32xf32>
    %242 = arith.subf %241, %240 : vector<8x32xf32>
    %243 = math.exp %242 : vector<8x32xf32>
    %cst_69 = arith.constant 1.000000e+00 : f32
    %244 = vector.broadcast %cst_69 : f32 to vector<8x32xf32>
    %245 = arith.addf %244, %243 : vector<8x32xf32>
    %246 = tpu.reciprocal %245 {approx = true} : vector<8x32xf32> -> vector<8x32xf32>
    %247 = vector.extract_strided_slice %246 {offsets = [0, 0], sizes = [8, 8], strides = [1, 1]} : vector<8x32xf32> to vector<8x8xf32>
    %248 = vector.extract_strided_slice %246 {offsets = [0, 8], sizes = [8, 8], strides = [1, 1]} : vector<8x32xf32> to vector<8x8xf32>
    %249 = vector.extract_strided_slice %246 {offsets = [0, 16], sizes = [8, 8], strides = [1, 1]} : vector<8x32xf32> to vector<8x8xf32>
    %cst_70 = arith.constant 2.000000e+00 : f32
    %250 = vector.broadcast %cst_70 : f32 to vector<8x8xf32>
    %251 = arith.mulf %250, %249 : vector<8x8xf32>
    %cst_71 = arith.constant 1.000000e+00 : f32
    %252 = vector.broadcast %cst_71 : f32 to vector<8x8xf32>
    %253 = arith.subf %251, %252 : vector<8x8xf32>
    %254 = vector.extract_strided_slice %246 {offsets = [0, 24], sizes = [8, 8], strides = [1, 1]} : vector<8x32xf32> to vector<8x8xf32>
    %255 = arith.mulf %248, %208 : vector<8x8xf32>
    %256 = arith.mulf %247, %253 : vector<8x8xf32>
    %257 = arith.addf %255, %256 : vector<8x8xf32>
    %258 = math.tanh %257 : vector<8x8xf32>
    %259 = arith.mulf %254, %258 : vector<8x8xf32>
    %260 = vector.extract_strided_slice %10 {offsets = [40, 0], sizes = [8, 128], strides = [1, 1]} : vector<64x128xf32> to vector<8x128xf32>
    %261 = arith.truncf %233 : vector<8x32xf32> to vector<8x32xbf16>
    %cst_72 = arith.constant dense<0.000000e+00> : vector<8x128xf32>
    %262 = tpu.matmul %261, %0, %cst_72 {dimension_numbers = #tpu.dot_dimension_numbers<[1], [0], [0], [1], [0, 0, 1, 1], [], []>} : vector<8x32xbf16>, vector<32x128xbf16>, vector<8x128xf32> -> vector<8x128xf32>
    %263 = arith.addf %260, %262 : vector<8x128xf32>
    %cst_73 = arith.constant 0.000000e+00 : f32
    %264 = vector.broadcast %cst_73 : f32 to vector<8x128xf32>
    %265 = arith.subf %264, %263 : vector<8x128xf32>
    %266 = math.exp %265 : vector<8x128xf32>
    %cst_74 = arith.constant 1.000000e+00 : f32
    %267 = vector.broadcast %cst_74 : f32 to vector<8x128xf32>
    %268 = arith.addf %267, %266 : vector<8x128xf32>
    %269 = tpu.reciprocal %268 {approx = true} : vector<8x128xf32> -> vector<8x128xf32>
    %270 = vector.extract_strided_slice %269 {offsets = [0, 0], sizes = [8, 32], strides = [1, 1]} : vector<8x128xf32> to vector<8x32xf32>
    %271 = vector.extract_strided_slice %269 {offsets = [0, 32], sizes = [8, 32], strides = [1, 1]} : vector<8x128xf32> to vector<8x32xf32>
    %272 = vector.extract_strided_slice %269 {offsets = [0, 64], sizes = [8, 32], strides = [1, 1]} : vector<8x128xf32> to vector<8x32xf32>
    %cst_75 = arith.constant 2.000000e+00 : f32
    %273 = vector.broadcast %cst_75 : f32 to vector<8x32xf32>
    %274 = arith.mulf %273, %272 : vector<8x32xf32>
    %cst_76 = arith.constant 1.000000e+00 : f32
    %275 = vector.broadcast %cst_76 : f32 to vector<8x32xf32>
    %276 = arith.subf %274, %275 : vector<8x32xf32>
    %277 = vector.extract_strided_slice %269 {offsets = [0, 96], sizes = [8, 32], strides = [1, 1]} : vector<8x128xf32> to vector<8x32xf32>
    %278 = arith.mulf %271, %231 : vector<8x32xf32>
    %279 = arith.mulf %270, %276 : vector<8x32xf32>
    %280 = arith.addf %278, %279 : vector<8x32xf32>
    %281 = math.tanh %280 : vector<8x32xf32>
    %282 = arith.mulf %277, %281 : vector<8x32xf32>
    %283 = arith.truncf %282 : vector<8x32xf32> to vector<8x32xbf16>
    %cst_77 = arith.constant dense<0.000000e+00> : vector<8x32xf32>
    %284 = tpu.matmul %283, %1, %cst_77 {dimension_numbers = #tpu.dot_dimension_numbers<[1], [0], [0], [1], [0, 0, 1, 1], [], []>} : vector<8x32xbf16>, vector<32x32xbf16>, vector<8x32xf32> -> vector<8x32xf32>
    %285 = arith.truncf %259 : vector<8x8xf32> to vector<8x8xbf16>
    %cst_78 = arith.constant dense<0.000000e+00> : vector<8x32xf32>
    %286 = tpu.matmul %285, %2, %cst_78 {dimension_numbers = #tpu.dot_dimension_numbers<[1], [0], [0], [1], [0, 0, 1, 1], [], []>} : vector<8x8xbf16>, vector<8x32xbf16>, vector<8x32xf32> -> vector<8x32xf32>
    %287 = arith.addf %284, %286 : vector<8x32xf32>
    %288 = vector.broadcast %3 : vector<1x32xf32> to vector<8x32xf32>
    %289 = arith.addf %287, %288 : vector<8x32xf32>
    %cst_79 = arith.constant 0.000000e+00 : f32
    %290 = vector.broadcast %cst_79 : f32 to vector<8x32xf32>
    %291 = arith.subf %290, %289 : vector<8x32xf32>
    %292 = math.exp %291 : vector<8x32xf32>
    %cst_80 = arith.constant 1.000000e+00 : f32
    %293 = vector.broadcast %cst_80 : f32 to vector<8x32xf32>
    %294 = arith.addf %293, %292 : vector<8x32xf32>
    %295 = tpu.reciprocal %294 {approx = true} : vector<8x32xf32> -> vector<8x32xf32>
    %296 = vector.extract_strided_slice %295 {offsets = [0, 0], sizes = [8, 8], strides = [1, 1]} : vector<8x32xf32> to vector<8x8xf32>
    %297 = vector.extract_strided_slice %295 {offsets = [0, 8], sizes = [8, 8], strides = [1, 1]} : vector<8x32xf32> to vector<8x8xf32>
    %298 = vector.extract_strided_slice %295 {offsets = [0, 16], sizes = [8, 8], strides = [1, 1]} : vector<8x32xf32> to vector<8x8xf32>
    %cst_81 = arith.constant 2.000000e+00 : f32
    %299 = vector.broadcast %cst_81 : f32 to vector<8x8xf32>
    %300 = arith.mulf %299, %298 : vector<8x8xf32>
    %cst_82 = arith.constant 1.000000e+00 : f32
    %301 = vector.broadcast %cst_82 : f32 to vector<8x8xf32>
    %302 = arith.subf %300, %301 : vector<8x8xf32>
    %303 = vector.extract_strided_slice %295 {offsets = [0, 24], sizes = [8, 8], strides = [1, 1]} : vector<8x32xf32> to vector<8x8xf32>
    %304 = arith.mulf %297, %257 : vector<8x8xf32>
    %305 = arith.mulf %296, %302 : vector<8x8xf32>
    %306 = arith.addf %304, %305 : vector<8x8xf32>
    %307 = math.tanh %306 : vector<8x8xf32>
    %308 = arith.mulf %303, %307 : vector<8x8xf32>
    %309 = vector.extract_strided_slice %10 {offsets = [48, 0], sizes = [8, 128], strides = [1, 1]} : vector<64x128xf32> to vector<8x128xf32>
    %310 = arith.truncf %282 : vector<8x32xf32> to vector<8x32xbf16>
    %cst_83 = arith.constant dense<0.000000e+00> : vector<8x128xf32>
    %311 = tpu.matmul %310, %0, %cst_83 {dimension_numbers = #tpu.dot_dimension_numbers<[1], [0], [0], [1], [0, 0, 1, 1], [], []>} : vector<8x32xbf16>, vector<32x128xbf16>, vector<8x128xf32> -> vector<8x128xf32>
    %312 = arith.addf %309, %311 : vector<8x128xf32>
    %cst_84 = arith.constant 0.000000e+00 : f32
    %313 = vector.broadcast %cst_84 : f32 to vector<8x128xf32>
    %314 = arith.subf %313, %312 : vector<8x128xf32>
    %315 = math.exp %314 : vector<8x128xf32>
    %cst_85 = arith.constant 1.000000e+00 : f32
    %316 = vector.broadcast %cst_85 : f32 to vector<8x128xf32>
    %317 = arith.addf %316, %315 : vector<8x128xf32>
    %318 = tpu.reciprocal %317 {approx = true} : vector<8x128xf32> -> vector<8x128xf32>
    %319 = vector.extract_strided_slice %318 {offsets = [0, 0], sizes = [8, 32], strides = [1, 1]} : vector<8x128xf32> to vector<8x32xf32>
    %320 = vector.extract_strided_slice %318 {offsets = [0, 32], sizes = [8, 32], strides = [1, 1]} : vector<8x128xf32> to vector<8x32xf32>
    %321 = vector.extract_strided_slice %318 {offsets = [0, 64], sizes = [8, 32], strides = [1, 1]} : vector<8x128xf32> to vector<8x32xf32>
    %cst_86 = arith.constant 2.000000e+00 : f32
    %322 = vector.broadcast %cst_86 : f32 to vector<8x32xf32>
    %323 = arith.mulf %322, %321 : vector<8x32xf32>
    %cst_87 = arith.constant 1.000000e+00 : f32
    %324 = vector.broadcast %cst_87 : f32 to vector<8x32xf32>
    %325 = arith.subf %323, %324 : vector<8x32xf32>
    %326 = vector.extract_strided_slice %318 {offsets = [0, 96], sizes = [8, 32], strides = [1, 1]} : vector<8x128xf32> to vector<8x32xf32>
    %327 = arith.mulf %320, %280 : vector<8x32xf32>
    %328 = arith.mulf %319, %325 : vector<8x32xf32>
    %329 = arith.addf %327, %328 : vector<8x32xf32>
    %330 = math.tanh %329 : vector<8x32xf32>
    %331 = arith.mulf %326, %330 : vector<8x32xf32>
    %332 = arith.truncf %331 : vector<8x32xf32> to vector<8x32xbf16>
    %cst_88 = arith.constant dense<0.000000e+00> : vector<8x32xf32>
    %333 = tpu.matmul %332, %1, %cst_88 {dimension_numbers = #tpu.dot_dimension_numbers<[1], [0], [0], [1], [0, 0, 1, 1], [], []>} : vector<8x32xbf16>, vector<32x32xbf16>, vector<8x32xf32> -> vector<8x32xf32>
    %334 = arith.truncf %308 : vector<8x8xf32> to vector<8x8xbf16>
    %cst_89 = arith.constant dense<0.000000e+00> : vector<8x32xf32>
    %335 = tpu.matmul %334, %2, %cst_89 {dimension_numbers = #tpu.dot_dimension_numbers<[1], [0], [0], [1], [0, 0, 1, 1], [], []>} : vector<8x8xbf16>, vector<8x32xbf16>, vector<8x32xf32> -> vector<8x32xf32>
    %336 = arith.addf %333, %335 : vector<8x32xf32>
    %337 = vector.broadcast %3 : vector<1x32xf32> to vector<8x32xf32>
    %338 = arith.addf %336, %337 : vector<8x32xf32>
    %cst_90 = arith.constant 0.000000e+00 : f32
    %339 = vector.broadcast %cst_90 : f32 to vector<8x32xf32>
    %340 = arith.subf %339, %338 : vector<8x32xf32>
    %341 = math.exp %340 : vector<8x32xf32>
    %cst_91 = arith.constant 1.000000e+00 : f32
    %342 = vector.broadcast %cst_91 : f32 to vector<8x32xf32>
    %343 = arith.addf %342, %341 : vector<8x32xf32>
    %344 = tpu.reciprocal %343 {approx = true} : vector<8x32xf32> -> vector<8x32xf32>
    %345 = vector.extract_strided_slice %344 {offsets = [0, 0], sizes = [8, 8], strides = [1, 1]} : vector<8x32xf32> to vector<8x8xf32>
    %346 = vector.extract_strided_slice %344 {offsets = [0, 8], sizes = [8, 8], strides = [1, 1]} : vector<8x32xf32> to vector<8x8xf32>
    %347 = vector.extract_strided_slice %344 {offsets = [0, 16], sizes = [8, 8], strides = [1, 1]} : vector<8x32xf32> to vector<8x8xf32>
    %cst_92 = arith.constant 2.000000e+00 : f32
    %348 = vector.broadcast %cst_92 : f32 to vector<8x8xf32>
    %349 = arith.mulf %348, %347 : vector<8x8xf32>
    %cst_93 = arith.constant 1.000000e+00 : f32
    %350 = vector.broadcast %cst_93 : f32 to vector<8x8xf32>
    %351 = arith.subf %349, %350 : vector<8x8xf32>
    %352 = vector.extract_strided_slice %344 {offsets = [0, 24], sizes = [8, 8], strides = [1, 1]} : vector<8x32xf32> to vector<8x8xf32>
    %353 = arith.mulf %346, %306 : vector<8x8xf32>
    %354 = arith.mulf %345, %351 : vector<8x8xf32>
    %355 = arith.addf %353, %354 : vector<8x8xf32>
    %356 = math.tanh %355 : vector<8x8xf32>
    %357 = arith.mulf %352, %356 : vector<8x8xf32>
    %358 = vector.extract_strided_slice %10 {offsets = [56, 0], sizes = [8, 128], strides = [1, 1]} : vector<64x128xf32> to vector<8x128xf32>
    %359 = arith.truncf %331 : vector<8x32xf32> to vector<8x32xbf16>
    %cst_94 = arith.constant dense<0.000000e+00> : vector<8x128xf32>
    %360 = tpu.matmul %359, %0, %cst_94 {dimension_numbers = #tpu.dot_dimension_numbers<[1], [0], [0], [1], [0, 0, 1, 1], [], []>} : vector<8x32xbf16>, vector<32x128xbf16>, vector<8x128xf32> -> vector<8x128xf32>
    %361 = arith.addf %358, %360 : vector<8x128xf32>
    %cst_95 = arith.constant 0.000000e+00 : f32
    %362 = vector.broadcast %cst_95 : f32 to vector<8x128xf32>
    %363 = arith.subf %362, %361 : vector<8x128xf32>
    %364 = math.exp %363 : vector<8x128xf32>
    %cst_96 = arith.constant 1.000000e+00 : f32
    %365 = vector.broadcast %cst_96 : f32 to vector<8x128xf32>
    %366 = arith.addf %365, %364 : vector<8x128xf32>
    %367 = tpu.reciprocal %366 {approx = true} : vector<8x128xf32> -> vector<8x128xf32>
    %368 = vector.extract_strided_slice %367 {offsets = [0, 0], sizes = [8, 32], strides = [1, 1]} : vector<8x128xf32> to vector<8x32xf32>
    %369 = vector.extract_strided_slice %367 {offsets = [0, 32], sizes = [8, 32], strides = [1, 1]} : vector<8x128xf32> to vector<8x32xf32>
    %370 = vector.extract_strided_slice %367 {offsets = [0, 64], sizes = [8, 32], strides = [1, 1]} : vector<8x128xf32> to vector<8x32xf32>
    %cst_97 = arith.constant 2.000000e+00 : f32
    %371 = vector.broadcast %cst_97 : f32 to vector<8x32xf32>
    %372 = arith.mulf %371, %370 : vector<8x32xf32>
    %cst_98 = arith.constant 1.000000e+00 : f32
    %373 = vector.broadcast %cst_98 : f32 to vector<8x32xf32>
    %374 = arith.subf %372, %373 : vector<8x32xf32>
    %375 = vector.extract_strided_slice %367 {offsets = [0, 96], sizes = [8, 32], strides = [1, 1]} : vector<8x128xf32> to vector<8x32xf32>
    %376 = arith.mulf %369, %329 : vector<8x32xf32>
    %377 = arith.mulf %368, %374 : vector<8x32xf32>
    %378 = arith.addf %376, %377 : vector<8x32xf32>
    %379 = math.tanh %378 : vector<8x32xf32>
    %380 = arith.mulf %375, %379 : vector<8x32xf32>
    %381 = arith.truncf %380 : vector<8x32xf32> to vector<8x32xbf16>
    %cst_99 = arith.constant dense<0.000000e+00> : vector<8x32xf32>
    %382 = tpu.matmul %381, %1, %cst_99 {dimension_numbers = #tpu.dot_dimension_numbers<[1], [0], [0], [1], [0, 0, 1, 1], [], []>} : vector<8x32xbf16>, vector<32x32xbf16>, vector<8x32xf32> -> vector<8x32xf32>
    %383 = arith.truncf %357 : vector<8x8xf32> to vector<8x8xbf16>
    %cst_100 = arith.constant dense<0.000000e+00> : vector<8x32xf32>
    %384 = tpu.matmul %383, %2, %cst_100 {dimension_numbers = #tpu.dot_dimension_numbers<[1], [0], [0], [1], [0, 0, 1, 1], [], []>} : vector<8x8xbf16>, vector<8x32xbf16>, vector<8x32xf32> -> vector<8x32xf32>
    %385 = arith.addf %382, %384 : vector<8x32xf32>
    %386 = vector.broadcast %3 : vector<1x32xf32> to vector<8x32xf32>
    %387 = arith.addf %385, %386 : vector<8x32xf32>
    %cst_101 = arith.constant 0.000000e+00 : f32
    %388 = vector.broadcast %cst_101 : f32 to vector<8x32xf32>
    %389 = arith.subf %388, %387 : vector<8x32xf32>
    %390 = math.exp %389 : vector<8x32xf32>
    %cst_102 = arith.constant 1.000000e+00 : f32
    %391 = vector.broadcast %cst_102 : f32 to vector<8x32xf32>
    %392 = arith.addf %391, %390 : vector<8x32xf32>
    %393 = tpu.reciprocal %392 {approx = true} : vector<8x32xf32> -> vector<8x32xf32>
    %394 = vector.extract_strided_slice %393 {offsets = [0, 0], sizes = [8, 8], strides = [1, 1]} : vector<8x32xf32> to vector<8x8xf32>
    %395 = vector.extract_strided_slice %393 {offsets = [0, 8], sizes = [8, 8], strides = [1, 1]} : vector<8x32xf32> to vector<8x8xf32>
    %396 = vector.extract_strided_slice %393 {offsets = [0, 16], sizes = [8, 8], strides = [1, 1]} : vector<8x32xf32> to vector<8x8xf32>
    %cst_103 = arith.constant 2.000000e+00 : f32
    %397 = vector.broadcast %cst_103 : f32 to vector<8x8xf32>
    %398 = arith.mulf %397, %396 : vector<8x8xf32>
    %cst_104 = arith.constant 1.000000e+00 : f32
    %399 = vector.broadcast %cst_104 : f32 to vector<8x8xf32>
    %400 = arith.subf %398, %399 : vector<8x8xf32>
    %401 = vector.extract_strided_slice %393 {offsets = [0, 24], sizes = [8, 8], strides = [1, 1]} : vector<8x32xf32> to vector<8x8xf32>
    %402 = arith.mulf %395, %355 : vector<8x8xf32>
    %403 = arith.mulf %394, %400 : vector<8x8xf32>
    %404 = arith.addf %402, %403 : vector<8x8xf32>
    %405 = math.tanh %404 : vector<8x8xf32>
    %406 = arith.mulf %401, %405 : vector<8x8xf32>
    %c0_105 = arith.constant 0 : index
    %c0_106 = arith.constant 0 : index
    %407 = vector.load %arg7[%c0_105, %c0_106] : memref<8x4xf32, #tpu.memory_space<vmem>>, vector<8x4xf32>
    %cst_107 = arith.constant dense<0.000000e+00> : vector<8x4xf32>
    %408 = tpu.matmul %406, %407, %cst_107 {dimension_numbers = #tpu.dot_dimension_numbers<[1], [0], [0], [1], [0, 0, 1, 1], [], []>} : vector<8x8xf32>, vector<8x4xf32>, vector<8x4xf32> -> vector<8x4xf32>
    %c0_108 = arith.constant 0 : index
    %c0_109 = arith.constant 0 : index
    %409 = vector.load %arg8[%c0_108, %c0_109] : memref<1x4xf32, #tpu.memory_space<vmem>>, vector<1x4xf32>
    %410 = vector.broadcast %409 : vector<1x4xf32> to vector<8x4xf32>
    %411 = arith.addf %408, %410 : vector<8x4xf32>
    %cst_110 = arith.constant dense<0xFF800000> : vector<8xf32>
    %412 = vector.multi_reduction <maximumf>, %411, %cst_110 [1] : vector<8x4xf32> to vector<8xf32>
    %413 = vector.shape_cast %412 : vector<8xf32> to vector<8x1xf32>
    %414 = vector.broadcast %413 : vector<8x1xf32> to vector<8x4xf32>
    %415 = arith.subf %411, %414 : vector<8x4xf32>
    %416 = math.exp %415 : vector<8x4xf32>
    %cst_111 = arith.constant dense<0.000000e+00> : vector<8xf32>
    %417 = vector.multi_reduction <add>, %416, %cst_111 [1] : vector<8x4xf32> to vector<8xf32>
    %418 = vector.shape_cast %417 : vector<8xf32> to vector<8x1xf32>
    %419 = vector.broadcast %418 : vector<8x1xf32> to vector<8x4xf32>
    %420 = arith.divf %416, %419 : vector<8x4xf32>
    %c0_112 = arith.constant 0 : index
    %c0_113 = arith.constant 0 : index
    %421 = vector.load %arg9[%c0_112, %c0_113] : memref<8x4xf32, #tpu.memory_space<vmem>>, vector<8x4xf32>
    tpu.vector_store %arg9[%c0_112, %c0_113], %420 {strides = array<i32>} : memref<8x4xf32, #tpu.memory_space<vmem>>, vector<8x4xf32>,
    return
  }
}

</mosaic_0001>

<bundles_post_ra>
// kernel: model_forward.2
= control target key start
LH: loop header
LB: loop body
LE: loop exit
PB: predicated region body
PF: predicated region fallthrough
CT: control target
= control target key end

     0   :  { %v2232_v1 = vmov 0.0   ;;  %vm108_vm0 = vcmask 130048   ;;  %vm2233_vm1 = vmmov 0   ;;  %v2234_v10 = vmov 0   ;;  %s2235_s24 = smov 64   ;;  %s2236_s25 = smov 32   ;;  %s2688_s0 = inlined_call_operand.vmem [shape: bf16[16,128], index: 0, kind: input, shape index: {}]   ;;  %s2689_s1 = inlined_call_operand.vmem [shape: bf16[32,128], index: 1, kind: input, shape index: {}]   ;;  %s2690_s2 = inlined_call_operand.vmem [shape: f32[1,128], index: 2, kind: input, shape index: {}]   ;;  %s2691_s3 = inlined_call_operand.vmem [shape: bf16[32,32], index: 3, kind: input, shape index: {}]   ;;  %s2692_s4 = inlined_call_operand.vmem [shape: bf16[8,32], index: 4, kind: input, shape index: {}]   ;;  %s2693_s5 = inlined_call_operand.vmem [shape: f32[1,32], index: 5, kind: input, shape index: {}]   ;;  %s2694_s6 = inlined_call_operand.vmem [shape: f32[8,4], index: 6, kind: input, shape index: {}]   ;;  %s2695_s7 = inlined_call_operand.vmem [shape: f32[1,4], index: 7, kind: input, shape index: {}]   ;;  %s2696_s8 = inlined_call_operand.vmem [shape: f32[8,8,16], index: 8, kind: input, shape index: {}]   ;;  %s2697_s9 = inlined_call_operand.vmem [shape: f32[8,4], index: 9, kind: output, shape index: {}]  }
   0x1   :  { %v2121_v0 = vld [vmem:[%s2688_s0] sm:$0xff]   ;;  %1931 = vmatprep.subr.bf16.mxu1 %v2232_v1  ;;  %v1792_v4 = vld [vmem:[%s2696_s8 + $0x8] sm:$0xff]  ;;  %v1793_v5 = vld [vmem:[%s2696_s8 + $0x10] sm:$0xff]  ;;  %1935 = vmatprep.mubr.msk.bf16.mxu1 %vm2233_vm1, %v2232_v1  ;;  %vm271_vm2 = vcmask 1043456   ;;  %vm198_vm3 = vcmask 261120   ;;  %s2237_s18 = smov 112  }
   0x2   :  { %v2298_v2 = vld [vmem:[%s2689_s1] sm:$0xff]   ;;  %1921 = vmatprep.subr.bf16.mxu0 %v2121_v0  ;;  %v1794_v7 = vld [vmem:[%s2696_s8 + $0x18] sm:$0xff]  ;;  %v2317_v9 = vld [vmem:[%s2689_s1 + $0x8] sm:$0xff]   ;;  %s2238_s19 = smov 8   ;;  %s2239_s20 = smov 16   ;;  %vm268_vm4 = vcmask 64512  }
   0x3   :  { %v32_v3 = vld [vmem:[%s2696_s8] sm:$0xff]  ;;  %1932 = vmatpush3.bf16.msra.mxu1 %v2298_v2  ;;  %1922 = vmatpush3.bf16.msra.mxu0 %v2121_v0  ;;  %v90_v8 = vpack.c.bf16 %v1794_v7, %v1793_v5  ;;  %v1796_v38 = vld [vmem:[%s2696_s8 + $0x28] sm:$0xff]  ;;  %v1797_v39 = vld [vmem:[%s2696_s8 + $0x30] sm:$0xff]  ;;  %s2240_s21 = smov 104   ;;  %vm1775_vm5 = vcmask 31744  }
   0x4   :  { %v89_v6 = vpack.c.bf16 %v1792_v4, %v32_v3  ;;  %1933 = vmatprep.subr.bf16.mxu1 %v2232_v1  ;;  %1945 = vmatprep.subr.bf16.mxu0 %v2232_v1  ;;  %v2331_v11 = vld [vmem:[%s2690_s2] ss:$0 sm:$0xff]  ;;  %v1798_v40 = vld [vmem:[%s2696_s8 + $0x38] sm:$0xff]  ;;  %v2372_v43 = vld [vmem:[%s2691_s3 + $0x8] sm:$0xff]  }
   0x5   :  { %v2348_v34 = vld [vmem:[%s2691_s3] sm:$0xff]   ;;  %v92_v42 = vpack.c.bf16 %v1798_v40, %v1797_v39 }
   0x6   :  { %1923 = vmatprep.mubr.msk.bf16.mxu0 %vm108_vm0, %v89_v6  ;;  %v79_v35 = vld [vmem:[%s2692_s4] sm:$0xf] }
   0x7   :  { %1924 = vmatmul.mubr.msk.bf16.vlgmr.msra.gmra.mrb[0].mxu0 %vm108_vm0, %v90_v8  ;;  %1934 = vmatpush3.bf16.msra.mxu1 %v2317_v9  ;;  %v1795_v36 = vld [vmem:[%s2696_s8 + $0x20] sm:$0xff]  ;;  %v2356_v37 = vsel %vm271_vm2, %v79_v35, 0 }
   0x8   :  { %1939 = vmatprep.subr.bf16.mxu1 %v2232_v1  ;;  %1946 = vmatpush3.bf16.msra.mxu0 %v2348_v34  ;;  %v91_v41 = vpack.c.bf16 %v1796_v38, %v1795_v36  ;;  %v2415_v58 = vld [vmem:[%s2693_s5] ss:$0 sm:$0xff] }
   0x9   :  { %1947 = vmatprep.subr.bf16.mxu0 %v2232_v1 }
   0xa   :  { %1936 = vmatmul.mubr.bf16.vlgmr.msra.gmra.mrb[0].mxu1 %v2234_v10  ;;  %1927 = vmatprep.mubr.msk.bf16.mxu0 %vm108_vm0, %v91_v41 }
   0xb   :  { %1941 = vmatprep.mubr.msk.bf16.mxu1 %vm2233_vm1, %v2232_v1  ;;  %1940 = vmatpush3.bf16.msra.mxu1 %v2356_v37 }
   0xc   :  { %1953 = vmatprep.subr.bf16.mxu1 %v2232_v1  ;;  %1948 = vmatpush3.bf16.msra.mxu0 %v2372_v43 }
   0xd   :  { %1961 = vmatprep.subr.bf16.mxu0 %v2232_v1 }
   0xf   :  { %1928 = vmatmul.mubr.msk.bf16.gmra.mrb[4].mxu0 %vm108_vm0, %v92_v42 }
  0x10   :  { %1949 = vmatprep.mubr.msk.bf16.mxu0 %vm2233_vm1, %v2232_v1 }
  0x12   :  { %1942 = vmatmul.mubr.bf16.vlgmr.msra.gmra.mrb[4].mxu1 %v2234_v10 }
  0x13   :  { %1954 = vmatpush3.bf16.msra.mxu1 %v2298_v2  ;;  %1957 = vmatprep.mubr.msk.bf16.mxu1 %vm2233_vm1, %v2232_v1 }
  0x14   :  { %1955 = vmatprep.subr.bf16.mxu1 %v2232_v1 }
  0x17   :  { %1956 = vmatpush3.bf16.msra.mxu1 %v2317_v9 }
  0x18   :  { %1967 = vmatprep.subr.bf16.mxu1 %v2232_v1 }
  0xda   :  { %v2333_v12 = vpop.f32.mrb[0].mxu0 }
  0xdb   :  { %v155_v13 = vpop.f32.mrb[1].mxu0 }
  0xdc   :  { %v156_v14 = vadd.f32 %v2331_v11, %v155_v13  ;;  %v2336_v15 = vpop.f32.mrb[2].mxu0 }
  0xdd   :  { %v2338_v16 = vpop.f32.mrb[3].mxu0  ;;  %v236_v17 = vpop.f32.mrb[0].mxu1 }
  0xde   :  { %v242_v18 = vadd.f32 %v236_v17, %v156_v14  ;;  %v1937_v19 = vpop.f32.mrb[1].mxu1  ;;  %v159_v57 = vadd.f32 %v2331_v11, %v2338_v16 }
  0xdf   :  { %v239_v20 = vpop.f32.mrb[2].mxu1 }
  0xe0   :  { %v243_v21 = vsub.f32 0.0, %v242_v18  ;;  %v1938_v22 = vpop.f32.mrb[3].mxu1 }
  0xe2   :  { %v244_v23 = vmul.f32 1.442695, %v243_v21  ;;  %v2390_v48 = vpop.f32.mrb[4].mxu0 }
  0xe3   :  { %v2392_v50 = vpop.f32.mrb[5].mxu0 }
  0xe4   :  { %2126 = vpow2.f32 %v244_v23  ;;  %v2394_v52 = vpop.f32.mrb[6].mxu0 }
  0xe5   :  { %v309_v49 = vpop.f32.mrb[4].mxu1  ;;  %v2396_v54 = vpop.f32.mrb[7].mxu0 }
  0xe6   :  { %v1943_v51 = vpop.f32.mrb[5].mxu1 }
  0xe7   :  { %v312_v53 = vpop.f32.mrb[6].mxu1 }
  0xe8   :  { %v1944_v55 = vpop.f32.mrb[7].mxu1 }
  0xee   :  { %v2127_v24 = vpop.eup %2126 }
  0xef   :  { %v246_v25 = vadd.f32 1.0, %v2127_v24 }
  0xf1   :  { %2128 = vrcp.f32 %v246_v25 }
  0xfb   :  { %v2129_v26 = vpop.eup %2128 }
  0xfc   :  { %v248_v27 = vmul.f32 2.0, %v2129_v26  ;;  %v250_v31 = vmul.f32 0.0, %v2129_v26 }
  0xfe   :  { %v1807_v28 = vadd.f32 -1.0, %v248_v27 }
 0x100   :  { %252 = vrot.lane.b32.xlu0 %v1807_v28, %s2235_s24 }
 0x172   :  { %v253_v29 = vpop.permute.xlu0 %252 }
 0x173   :  { %v255_v30 = vmul.f32 %v2129_v26, %v253_v29 }
 0x175   :  { %257 = vrot.lane.b32.xlu0 %v255_v30, %s2236_s25 }
 0x1e7   :  { %v258_v32 = vpop.permute.xlu0 %257 }
 0x1e8   :  { %v2342_v33 = vadd.f32 %v258_v32, %v250_v31 }
 0x1ea   :  { %2130 = vtanh.f32 %v2342_v33 }
 0x1f4   :  { %v2131_v44 = vpop.eup %2130 }
 0x1f5   :  { %263 = vrot.lane.b32.xlu1 %v2131_v44, %s2235_s24 }
 0x267   :  { %v264_v45 = vpop.permute.xlu1 %263 }
 0x268   :  { %v266_v46 = vmul.f32 %v2129_v26, %v264_v45 }
 0x26a   :  { %v267_v47 = vpack.c.bf16 %v266_v46, %v266_v46 }
 0x26c   :  { %316 = vrot.lane.b32.xlu1 %v267_v47, %s2236_s25 }
 0x2de   :  { %v317_v56 = vpop.permute.xlu1 %316 }
 0x2df   :  { %1950 = vmatmul.mubr.msk.bf16.vlgmr.msra.gmra.mrb[8].mxu0 %vm198_vm3, %v317_v56  ;;  %1958 = vmatmul.mubr.msk.bf16.vlgmr.msra.gmra.mrb[8].mxu1 %vm198_vm3, %v317_v56 }
 0x2e0   :  { %1968 = vmatpush3.bf16.msra.mxu1 %v2348_v34  ;;  %1962 = vmatpush3.bf16.msra.mxu0 %v2356_v37 }
 0x2e1   :  { %1969 = vmatprep.subr.bf16.mxu1 %v2232_v1  ;;  %1971 = vmatprep.mubr.msk.bf16.mxu1 %vm2233_vm1, %v2232_v1 }
 0x2e2   :  { %1963 = vmatprep.mubr.msk.bf16.mxu0 %vm2233_vm1, %v2232_v1  ;;  %1975 = vmatprep.subr.bf16.mxu0 %v2232_v1 }
 0x2e4   :  { %1970 = vmatpush3.bf16.msra.mxu1 %v2372_v43 }
 0x2e5   :  { %1983 = vmatprep.subr.bf16.mxu1 %v2232_v1 }
 0x3b2   :  { %v367_v59 = vpop.f32.mrb[8].mxu0  ;;  %v438_v60 = vpop.f32.mrb[8].mxu1 }
 0x3b3   :  { %v368_v61 = vadd.f32 %v367_v59, %v309_v49  ;;  %v444_v62 = vadd.f32 %v438_v60, %v159_v57  ;;  %v1951_v63 = vpop.f32.mrb[9].mxu0  ;;  %v1959_v0 = vpop.f32.mrb[9].mxu1 }
 0x3b4   :  { %v370_v3 = vpop.f32.mrb[10].mxu0  ;;  %v441_v4 = vpop.f32.mrb[10].mxu1 }
 0x3b5   :  { %v379_v5 = vadd.f32 %v2415_v58, %v368_v61  ;;  %v445_v6 = vsub.f32 0.0, %v444_v62  ;;  %v1952_v7 = vpop.f32.mrb[11].mxu0  ;;  %v1960_v8 = vpop.f32.mrb[11].mxu1  ;;  %v164_v3 = vadd.f32 %v2333_v12, %v2331_v11 }
 0x3b7   :  { %v380_v10 = vsub.f32 0.0, %v379_v5  ;;  %v446_v13 = vmul.f32 1.442695, %v445_v6 }
 0x3b9   :  { %v381_v14 = vmul.f32 1.442695, %v380_v10  ;;  %2132 = vpow2.f32 %v446_v13 }
 0x3bb   :  { %2134 = vpow2.f32 %v381_v14 }
 0x3c3   :  { %v2133_v16 = vpop.eup %2132 }
 0x3c4   :  { %v448_v17 = vadd.f32 1.0, %v2133_v16 }
 0x3c5   :  { %v2135_v18 = vpop.eup %2134 }
 0x3c6   :  { %v383_v19 = vadd.f32 1.0, %v2135_v18  ;;  %2136 = vrcp.f32 %v448_v17 }
 0x3c8   :  { %2138 = vrcp.f32 %v383_v19 }
 0x3d0   :  { %v2137_v20 = vpop.eup %2136 }
 0x3d1   :  { %v450_v21 = vmul.f32 2.0, %v2137_v20  ;;  %v452_v30 = vmul.f32 %v2137_v20, %v2342_v33 }
 0x3d2   :  { %v2139_v22 = vpop.eup %2138 }
 0x3d3   :  { %v1814_v23 = vadd.f32 -1.0, %v450_v21  ;;  %v385_v24 = vmul.f32 2.0, %v2139_v22  ;;  %v387_v35 = vmul.f32 0.0, %v2139_v22 }
 0x3d5   :  { %454 = vrot.lane.b32.xlu1 %v1814_v23, %s2235_s24  ;;  %v1812_v25 = vadd.f32 -1.0, %v385_v24 }
 0x3d7   :  { %389 = vrot.lane.b32.xlu0 %v1812_v25, %s2237_s18 }
 0x447   :  { %v455_v26 = vpop.permute.xlu1 %454 }
 0x448   :  { %v457_v27 = vmul.f32 %v2137_v20, %v455_v26 }
 0x449   :  { %v390_v28 = vpop.permute.xlu0 %389 }
 0x44a   :  { %v392_v29 = vmul.f32 %v2139_v22, %v390_v28  ;;  %459 = vrot.lane.b32.xlu1 %v457_v27, %s2236_s25 }
 0x44c   :  { %394 = vrot.lane.b32.xlu0 %v392_v29, %s2238_s19 }
 0x4bc   :  { %v460_v31 = vpop.permute.xlu1 %459 }
 0x4bd   :  { %v2423_v32 = vadd.f32 %v460_v31, %v452_v30 }
 0x4be   :  { %v395_v36 = vpop.permute.xlu0 %394 }
 0x4bf   :  { %2140 = vtanh.f32 %v2423_v32  ;;  %v2426_v38 = vadd.f32 %v395_v36, %v387_v35 }
 0x4c1   :  { %2142 = vtanh.f32 %v2426_v38 }
 0x4c9   :  { %v2141_v39 = vpop.eup %2140 }
 0x4ca   :  { %465 = vrot.lane.b32.xlu1 %v2141_v39, %s2235_s24 }
 0x4cb   :  { %v2143_v40 = vpop.eup %2142 }
 0x4cc   :  { %400 = vrot.lane.b32.xlu0 %v2143_v40, %s2239_s20 }
 0x53c   :  { %v466_v41 = vpop.permute.xlu1 %465 }
 0x53d   :  { %v468_v33 = vmul.f32 %v2137_v20, %v466_v41 }
 0x53e   :  { %v401_v42 = vpop.permute.xlu0 %400 }
 0x53f   :  { %v469_v44 = vpack.c.bf16 %v468_v33, %v468_v33  ;;  %v403_v45 = vmul.f32 %v2139_v22, %v401_v42 }
 0x541   :  { %v470_v46 = vpack.c.bf16 %v403_v45, %v403_v45  ;;  %518 = vrot.lane.b32.xlu1 %v469_v44, %s2236_s25 }
 0x543   :  { %472 = vrot.lane.b32.xlu0 %v470_v46, %s2240_s21 }
 0x5b3   :  { %v519_v47 = vpop.permute.xlu1 %518 }
 0x5b4   :  { %1972 = vmatmul.mubr.msk.bf16.vlgmr.msra.gmra.mrb[12].mxu1 %vm198_vm3, %v519_v47 }
 0x5b5   :  { %v473_v49 = vpop.permute.xlu0 %472  ;;  %1984 = vmatpush3.bf16.msra.mxu1 %v2356_v37  ;;  %1985 = vmatprep.mubr.msk.bf16.mxu1 %vm2233_vm1, %v2232_v1 }
 0x5b6   :  { %1964 = vmatmul.mubr.msk.bf16.vlgmr.msra.gmra.mrb[12].mxu0 %vm268_vm4, %v473_v49  ;;  %1997 = vmatprep.subr.bf16.mxu1 %v2232_v1 }
 0x5b7   :  { %1976 = vmatpush3.bf16.msra.mxu0 %v2298_v2  ;;  %1979 = vmatprep.mubr.msk.bf16.mxu0 %vm2233_vm1, %v2232_v1 }
 0x5b8   :  { %1977 = vmatprep.subr.bf16.mxu0 %v2232_v1 }
 0x5bb   :  { %1978 = vmatpush3.bf16.msra.mxu0 %v2317_v9 }
 0x5bc   :  { %1989 = vmatprep.subr.bf16.mxu0 %v2232_v1 }
 0x5be   :  { %1980 = vmatmul.mubr.msk.bf16.vlgmr.msra.gmra.mrb[16].mxu0 %vm198_vm3, %v519_v47 }
 0x5bf   :  { %1990 = vmatpush3.bf16.msra.mxu0 %v2348_v34  ;;  %1993 = vmatprep.mubr.msk.bf16.mxu0 %vm2233_vm1, %v2232_v1 }
 0x5c0   :  { %1991 = vmatprep.subr.bf16.mxu0 %v2232_v1 }
 0x5c3   :  { %1992 = vmatpush3.bf16.msra.mxu0 %v2372_v43 }
 0x5c4   :  { %2005 = vmatprep.subr.bf16.mxu0 %v2232_v1 }
 0x687   :  { %v557_v51 = vpop.f32.mrb[12].mxu1 }
 0x688   :  { %v1973_v53 = vpop.f32.mrb[13].mxu1 }
 0x689   :  { %v511_v55 = vpop.f32.mrb[12].mxu0  ;;  %v560_v56 = vpop.f32.mrb[14].mxu1 }
 0x68a   :  { %v558_v57 = vadd.f32 %v557_v51, %v511_v55  ;;  %v1965_v59 = vpop.f32.mrb[13].mxu0  ;;  %v1974_v60 = vpop.f32.mrb[15].mxu1 }
 0x68b   :  { %v514_v61 = vpop.f32.mrb[14].mxu0 }
 0x68c   :  { %v563_v62 = vadd.f32 %v2415_v58, %v558_v57  ;;  %v1966_v63 = vpop.f32.mrb[15].mxu0  ;;  %v167_v57 = vadd.f32 %v2336_v15, %v2331_v11 }
 0x68e   :  { %v564_v0 = vsub.f32 0.0, %v563_v62 }
 0x690   :  { %v565_v4 = vmul.f32 1.442695, %v564_v0 }
 0x691   :  { %v622_v5 = vpop.f32.mrb[16].mxu0 }
 0x692   :  { %2144 = vpow2.f32 %v565_v4  ;;  %v628_v6 = vadd.f32 %v622_v5, %v164_v3  ;;  %v1981_v7 = vpop.f32.mrb[17].mxu0 }
 0x693   :  { %v625_v8 = vpop.f32.mrb[18].mxu0 }
 0x694   :  { %v629_v10 = vsub.f32 0.0, %v628_v6  ;;  %v1982_v13 = vpop.f32.mrb[19].mxu0 }
 0x696   :  { %v630_v14 = vmul.f32 1.442695, %v629_v10 }
 0x698   :  { %2146 = vpow2.f32 %v630_v14 }
 0x69c   :  { %v2145_v16 = vpop.eup %2144 }
 0x69d   :  { %v567_v17 = vadd.f32 1.0, %v2145_v16 }
 0x69f   :  { %2148 = vrcp.f32 %v567_v17 }
 0x6a2   :  { %v2147_v18 = vpop.eup %2146 }
 0x6a3   :  { %v632_v19 = vadd.f32 1.0, %v2147_v18 }
 0x6a5   :  { %2150 = vrcp.f32 %v632_v19 }
 0x6a9   :  { %v2149_v20 = vpop.eup %2148 }
 0x6aa   :  { %v569_v21 = vmul.f32 2.0, %v2149_v20  ;;  %v571_v29 = vmul.f32 %v2149_v20, %v2426_v38 }
 0x6ac   :  { %v1817_v22 = vadd.f32 -1.0, %v569_v21 }
 0x6ae   :  { %573 = vrot.lane.b32.xlu0 %v1817_v22, %s2237_s18 }
 0x6af   :  { %v2151_v12 = vpop.eup %2150 }
 0x6b0   :  { %v634_v23 = vmul.f32 2.0, %v2151_v12  ;;  %v636_v35 = vmul.f32 %v2151_v12, %v2423_v32 }
 0x6b2   :  { %v1819_v24 = vadd.f32 -1.0, %v634_v23 }
 0x6b4   :  { %638 = vrot.lane.b32.xlu1 %v1819_v24, %s2235_s24 }
 0x720   :  { %v574_v25 = vpop.permute.xlu0 %573 }
 0x721   :  { %v576_v26 = vmul.f32 %v2149_v20, %v574_v25 }
 0x723   :  { %578 = vrot.lane.b32.xlu0 %v576_v26, %s2238_s19 }
 0x726   :  { %v639_v27 = vpop.permute.xlu1 %638 }
 0x727   :  { %v641_v28 = vmul.f32 %v2151_v12, %v639_v27 }
 0x729   :  { %643 = vrot.lane.b32.xlu1 %v641_v28, %s2236_s25 }
 0x795   :  { %v579_v30 = vpop.permute.xlu0 %578 }
 0x796   :  { %v2460_v31 = vadd.f32 %v579_v30, %v571_v29 }
 0x798   :  { %2152 = vtanh.f32 %v2460_v31 }
 0x79b   :  { %v644_v36 = vpop.permute.xlu1 %643 }
 0x79c   :  { %v2464_v39 = vadd.f32 %v644_v36, %v636_v35 }
 0x79e   :  { %2154 = vtanh.f32 %v2464_v39 }
 0x7a2   :  { %v2153_v40 = vpop.eup %2152 }
 0x7a3   :  { %584 = vrot.lane.b32.xlu0 %v2153_v40, %s2239_s20 }
 0x7a8   :  { %v2155_v41 = vpop.eup %2154 }
 0x7a9   :  { %649 = vrot.lane.b32.xlu1 %v2155_v41, %s2235_s24 }
 0x815   :  { %v585_v33 = vpop.permute.xlu0 %584 }
 0x816   :  { %v587_v38 = vmul.f32 %v2149_v20, %v585_v33 }
 0x818   :  { %v654_v42 = vpack.c.bf16 %v587_v38, %v587_v38 }
 0x81a   :  { %656 = vrot.lane.b32.xlu0 %v654_v42, %s2240_s21 }
 0x81b   :  { %v650_v44 = vpop.permute.xlu1 %649 }
 0x81c   :  { %v652_v45 = vmul.f32 %v2151_v12, %v650_v44 }
 0x81e   :  { %v653_v46 = vpack.c.bf16 %v652_v45, %v652_v45 }
 0x820   :  { %702 = vrot.lane.b32.xlu1 %v653_v46, %s2236_s25 }
 0x88c   :  { %v657_v32 = vpop.permute.xlu0 %656 }
 0x88d   :  { %1986 = vmatmul.mubr.msk.bf16.vlgmr.msra.gmra.mrb[16].mxu1 %vm268_vm4, %v657_v32 }
 0x88e   :  { %1998 = vmatpush3.bf16.msra.mxu1 %v2298_v2  ;;  %2001 = vmatprep.mubr.msk.bf16.mxu1 %vm2233_vm1, %v2232_v1 }
 0x88f   :  { %1999 = vmatprep.subr.bf16.mxu1 %v2232_v1 }
 0x892   :  { %2000 = vmatpush3.bf16.msra.mxu1 %v2317_v9  ;;  %v703_v47 = vpop.permute.xlu1 %702 }
 0x893   :  { %1994 = vmatmul.mubr.msk.bf16.vlgmr.msra.gmra.mrb[20].mxu0 %vm198_vm3, %v703_v47  ;;  %2011 = vmatprep.subr.bf16.mxu1 %v2232_v1 }
 0x894   :  { %2006 = vmatpush3.bf16.msra.mxu0 %v2356_v37  ;;  %2007 = vmatprep.mubr.msk.bf16.mxu0 %vm2233_vm1, %v2232_v1 }
 0x895   :  { %2002 = vmatmul.mubr.msk.bf16.vlgmr.msra.gmra.mrb[20].mxu1 %vm198_vm3, %v703_v47  ;;  %2019 = vmatprep.subr.bf16.mxu0 %v2232_v1 }
 0x896   :  { %2012 = vmatpush3.bf16.msra.mxu1 %v2348_v34  ;;  %2015 = vmatprep.mubr.msk.bf16.mxu1 %vm2233_vm1, %v2232_v1 }
 0x897   :  { %2013 = vmatprep.subr.bf16.mxu1 %v2232_v1 }
 0x89a   :  { %2014 = vmatpush3.bf16.msra.mxu1 %v2372_v43 }
 0x89b   :  { %2027 = vmatprep.subr.bf16.mxu1 %v2232_v1 }
 0x960   :  { %v695_v49 = vpop.f32.mrb[16].mxu1 }
 0x961   :  { %v1987_v51 = vpop.f32.mrb[17].mxu1 }
 0x962   :  { %v698_v53 = vpop.f32.mrb[18].mxu1 }
 0x963   :  { %v1988_v55 = vpop.f32.mrb[19].mxu1 }
 0x966   :  { %v741_v56 = vpop.f32.mrb[20].mxu0 }
 0x967   :  { %v742_v59 = vadd.f32 %v741_v56, %v695_v49  ;;  %v1995_v60 = vpop.f32.mrb[21].mxu0 }
 0x968   :  { %v744_v61 = vpop.f32.mrb[22].mxu0  ;;  %v806_v62 = vpop.f32.mrb[20].mxu1 }
 0x969   :  { %v747_v63 = vadd.f32 %v2415_v58, %v742_v59  ;;  %v812_v0 = vadd.f32 %v806_v62, %v167_v57  ;;  %v1996_v3 = vpop.f32.mrb[23].mxu0  ;;  %v2003_v4 = vpop.f32.mrb[21].mxu1  ;;  %v172_v62 = vadd.f32 %v2331_v11, %v2392_v50 }
 0x96a   :  { %v809_v5 = vpop.f32.mrb[22].mxu1 }
 0x96b   :  { %v748_v6 = vsub.f32 0.0, %v747_v63  ;;  %v813_v7 = vsub.f32 0.0, %v812_v0  ;;  %v2004_v8 = vpop.f32.mrb[23].mxu1 }
 0x96d   :  { %v749_v10 = vmul.f32 1.442695, %v748_v6  ;;  %v814_v13 = vmul.f32 1.442695, %v813_v7 }
 0x96f   :  { %2156 = vpow2.f32 %v749_v10 }
 0x970   :  { %2158 = vpow2.f32 %v814_v13 }
 0x979   :  { %v2157_v14 = vpop.eup %2156 }
 0x97a   :  { %v2159_v16 = vpop.eup %2158  ;;  %v751_v15 = vadd.f32 1.0, %v2157_v14 }
 0x97b   :  { %v816_v17 = vadd.f32 1.0, %v2159_v16 }
 0x97c   :  { %2160 = vrcp.f32 %v751_v15 }
 0x97d   :  { %2162 = vrcp.f32 %v816_v17 }
 0x986   :  { %v2161_v18 = vpop.eup %2160 }
 0x987   :  { %v2163_v19 = vpop.eup %2162  ;;  %v753_v20 = vmul.f32 2.0, %v2161_v18  ;;  %v755_v27 = vmul.f32 %v2161_v18, %v2460_v31 }
 0x988   :  { %v818_v21 = vmul.f32 2.0, %v2163_v19  ;;  %v820_v28 = vmul.f32 %v2163_v19, %v2464_v39 }
 0x989   :  { %v1822_v22 = vadd.f32 -1.0, %v753_v20 }
 0x98a   :  { %v1824_v12 = vadd.f32 -1.0, %v818_v21 }
 0x98b   :  { %757 = vrot.lane.b32.xlu0 %v1822_v22, %s2237_s18 }
 0x98c   :  { %822 = vrot.lane.b32.xlu1 %v1824_v12, %s2235_s24 }
 0x9fd   :  { %v758_v23 = vpop.permute.xlu0 %757 }
 0x9fe   :  { %v823_v24 = vpop.permute.xlu1 %822  ;;  %v760_v25 = vmul.f32 %v2161_v18, %v758_v23 }
 0x9ff   :  { %v825_v26 = vmul.f32 %v2163_v19, %v823_v24 }
 0xa00   :  { %762 = vrot.lane.b32.xlu0 %v760_v25, %s2238_s19 }
 0xa01   :  { %827 = vrot.lane.b32.xlu1 %v825_v26, %s2236_s25 }
 0xa72   :  { %v763_v29 = vpop.permute.xlu0 %762 }
 0xa73   :  { %v828_v30 = vpop.permute.xlu1 %827  ;;  %v2499_v35 = vadd.f32 %v763_v29, %v755_v27 }
 0xa74   :  { %v2501_v36 = vadd.f32 %v828_v30, %v820_v28 }
 0xa75   :  { %2164 = vtanh.f32 %v2499_v35 }
 0xa76   :  { %2166 = vtanh.f32 %v2501_v36 }
 0xa7f   :  { %v2165_v40 = vpop.eup %2164 }
 0xa80   :  { %v2167_v41 = vpop.eup %2166  ;;  %768 = vrot.lane.b32.xlu0 %v2165_v40, %s2239_s20 }
 0xa81   :  { %833 = vrot.lane.b32.xlu1 %v2167_v41, %s2235_s24 }
 0xaf2   :  { %v769_v33 = vpop.permute.xlu0 %768 }
 0xaf3   :  { %v834_v31 = vpop.permute.xlu1 %833  ;;  %v771_v38 = vmul.f32 %v2161_v18, %v769_v33 }
 0xaf4   :  { %v836_v39 = vmul.f32 %v2163_v19, %v834_v31 }
 0xaf5   :  { %v838_v42 = vpack.c.bf16 %v771_v38, %v771_v38 }
 0xaf6   :  { %v837_v44 = vpack.c.bf16 %v836_v39, %v836_v39 }
 0xaf7   :  { %840 = vrot.lane.b32.xlu0 %v838_v42, %s2240_s21 }
 0xaf8   :  { %886 = vrot.lane.b32.xlu1 %v837_v44, %s2236_s25 }
 0xb69   :  { %v841_v45 = vpop.permute.xlu0 %840 }
 0xb6a   :  { %v887_v46 = vpop.permute.xlu1 %886  ;;  %2008 = vmatmul.mubr.msk.bf16.vlgmr.msra.gmra.mrb[24].mxu0 %vm268_vm4, %v841_v45 }
 0xb6b   :  { %2016 = vmatmul.mubr.msk.bf16.vlgmr.msra.gmra.mrb[24].mxu1 %vm198_vm3, %v887_v46  ;;  %2020 = vmatpush3.bf16.msra.mxu0 %v2298_v2 }
 0xb6c   :  { %2021 = vmatprep.subr.bf16.mxu0 %v2232_v1  ;;  %2023 = vmatprep.mubr.msk.bf16.mxu0 %vm2233_vm1, %v2232_v1 }
 0xb6d   :  { %2028 = vmatpush3.bf16.msra.mxu1 %v2356_v37  ;;  %2029 = vmatprep.mubr.msk.bf16.mxu1 %vm2233_vm1, %v2232_v1 }
 0xb6e   :  { %2041 = vmatprep.subr.bf16.mxu1 %v2232_v1 }
 0xb6f   :  { %2022 = vmatpush3.bf16.msra.mxu0 %v2317_v9 }
 0xb70   :  { %2033 = vmatprep.subr.bf16.mxu0 %v2232_v1 }
 0xb72   :  { %2024 = vmatmul.mubr.msk.bf16.vlgmr.msra.gmra.mrb[28].mxu0 %vm198_vm3, %v887_v46 }
 0xb73   :  { %2034 = vmatpush3.bf16.msra.mxu0 %v2348_v34  ;;  %2037 = vmatprep.mubr.msk.bf16.mxu0 %vm2233_vm1, %v2232_v1 }
 0xb74   :  { %2035 = vmatprep.subr.bf16.mxu0 %v2232_v1 }
 0xb77   :  { %2036 = vmatpush3.bf16.msra.mxu0 %v2372_v43 }
 0xb78   :  { %2049 = vmatprep.subr.bf16.mxu0 %v2232_v1 }
 0xc3d   :  { %v879_v32 = vpop.f32.mrb[24].mxu0 }
 0xc3e   :  { %v925_v47 = vpop.f32.mrb[24].mxu1  ;;  %v2009_v49 = vpop.f32.mrb[25].mxu0 }
 0xc3f   :  { %v926_v51 = vadd.f32 %v925_v47, %v879_v32  ;;  %v2017_v53 = vpop.f32.mrb[25].mxu1  ;;  %v882_v55 = vpop.f32.mrb[26].mxu0 }
 0xc40   :  { %v928_v56 = vpop.f32.mrb[26].mxu1  ;;  %v2010_v57 = vpop.f32.mrb[27].mxu0  ;;  %v175_v53 = vadd.f32 %v2331_v11, %v2396_v54 }
 0xc41   :  { %v931_v59 = vadd.f32 %v2415_v58, %v926_v51  ;;  %v2018_v60 = vpop.f32.mrb[27].mxu1 }
 0xc43   :  { %v932_v61 = vsub.f32 0.0, %v931_v59 }
 0xc45   :  { %v933_v63 = vmul.f32 1.442695, %v932_v61  ;;  %v990_v0 = vpop.f32.mrb[28].mxu0 }
 0xc46   :  { %v996_v3 = vadd.f32 %v990_v0, %v172_v62  ;;  %v2025_v4 = vpop.f32.mrb[29].mxu0 }
 0xc47   :  { %2168 = vpow2.f32 %v933_v63  ;;  %v993_v5 = vpop.f32.mrb[30].mxu0 }
 0xc48   :  { %v997_v6 = vsub.f32 0.0, %v996_v3  ;;  %v2026_v7 = vpop.f32.mrb[31].mxu0 }
 0xc4a   :  { %v998_v8 = vmul.f32 1.442695, %v997_v6 }
 0xc4c   :  { %2170 = vpow2.f32 %v998_v8 }
 0xc51   :  { %v2169_v10 = vpop.eup %2168 }
 0xc52   :  { %v935_v13 = vadd.f32 1.0, %v2169_v10 }
 0xc54   :  { %2172 = vrcp.f32 %v935_v13 }
 0xc56   :  { %v2171_v14 = vpop.eup %2170 }
 0xc57   :  { %v1000_v16 = vadd.f32 1.0, %v2171_v14 }
 0xc59   :  { %2174 = vrcp.f32 %v1000_v16 }
 0xc5e   :  { %v2173_v15 = vpop.eup %2172 }
 0xc5f   :  { %v937_v17 = vmul.f32 2.0, %v2173_v15  ;;  %v939_v24 = vmul.f32 %v2173_v15, %v2499_v35 }
 0xc61   :  { %v1827_v18 = vadd.f32 -1.0, %v937_v17 }
 0xc63   :  { %v2175_v50 = vpop.eup %2174  ;;  %941 = vrot.lane.b32.xlu0 %v1827_v18, %s2237_s18 }
 0xc64   :  { %v1002_v19 = vmul.f32 2.0, %v2175_v50  ;;  %v1004_v27 = vmul.f32 %v2175_v50, %v2501_v36 }
 0xc66   :  { %v1829_v20 = vadd.f32 -1.0, %v1002_v19 }
 0xc68   :  { %1006 = vrot.lane.b32.xlu1 %v1829_v20, %s2235_s24 }
 0xcd5   :  { %v942_v21 = vpop.permute.xlu0 %941 }
 0xcd6   :  { %v944_v22 = vmul.f32 %v2173_v15, %v942_v21 }
 0xcd8   :  { %946 = vrot.lane.b32.xlu0 %v944_v22, %s2238_s19 }
 0xcda   :  { %v1007_v12 = vpop.permute.xlu1 %1006 }
 0xcdb   :  { %v1009_v23 = vmul.f32 %v2175_v50, %v1007_v12 }
 0xcdd   :  { %1011 = vrot.lane.b32.xlu1 %v1009_v23, %s2236_s25 }
 0xd4a   :  { %v947_v25 = vpop.permute.xlu0 %946 }
 0xd4b   :  { %v2536_v26 = vadd.f32 %v947_v25, %v939_v24 }
 0xd4d   :  { %2176 = vtanh.f32 %v2536_v26 }
 0xd4f   :  { %v1012_v28 = vpop.permute.xlu1 %1011 }
 0xd50   :  { %v2540_v29 = vadd.f32 %v1012_v28, %v1004_v27 }
 0xd52   :  { %2178 = vtanh.f32 %v2540_v29 }
 0xd57   :  { %v2177_v30 = vpop.eup %2176 }
 0xd58   :  { %952 = vrot.lane.b32.xlu0 %v2177_v30, %s2239_s20 }
 0xd5c   :  { %v2179_v40 = vpop.eup %2178 }
 0xd5d   :  { %1017 = vrot.lane.b32.xlu1 %v2179_v40, %s2235_s24 }
 0xdca   :  { %v953_v41 = vpop.permute.xlu0 %952 }
 0xdcb   :  { %v955_v35 = vmul.f32 %v2173_v15, %v953_v41 }
 0xdcd   :  { %v1022_v33 = vpack.c.bf16 %v955_v35, %v955_v35 }
 0xdcf   :  { %1024 = vrot.lane.b32.xlu0 %v1022_v33, %s2240_s21  ;;  %v1018_v31 = vpop.permute.xlu1 %1017 }
 0xdd0   :  { %v1020_v38 = vmul.f32 %v2175_v50, %v1018_v31 }
 0xdd2   :  { %v1021_v39 = vpack.c.bf16 %v1020_v38, %v1020_v38 }
 0xdd4   :  { %1070 = vrot.lane.b32.xlu1 %v1021_v39, %s2236_s25 }
 0xe41   :  { %v1025_v36 = vpop.permute.xlu0 %1024 }
 0xe42   :  { %2030 = vmatmul.mubr.msk.bf16.vlgmr.msra.gmra.mrb[28].mxu1 %vm268_vm4, %v1025_v36 }
 0xe43   :  { %2042 = vmatpush3.bf16.msra.mxu1 %v2298_v2  ;;  %2045 = vmatprep.mubr.msk.bf16.mxu1 %vm2233_vm1, %v2232_v1 }
 0xe44   :  { %2043 = vmatprep.subr.bf16.mxu1 %v2232_v1 }
 0xe46   :  { %v1071_v42 = vpop.permute.xlu1 %1070 }
 0xe47   :  { %2044 = vmatpush3.bf16.msra.mxu1 %v2317_v9  ;;  %2038 = vmatmul.mubr.msk.bf16.vlgmr.msra.gmra.mrb[32].mxu0 %vm198_vm3, %v1071_v42 }
 0xe48   :  { %2055 = vmatprep.subr.bf16.mxu1 %v2232_v1  ;;  %2050 = vmatpush3.bf16.msra.mxu0 %v2356_v37 }
 0xe49   :  { %2051 = vmatprep.mubr.msk.bf16.mxu0 %vm2233_vm1, %v2232_v1  ;;  %2063 = vmatprep.subr.bf16.mxu0 %v2232_v1 }
 0xe4a   :  { %2046 = vmatmul.mubr.msk.bf16.vlgmr.msra.gmra.mrb[32].mxu1 %vm198_vm3, %v1071_v42 }
 0xe4b   :  { %2056 = vmatpush3.bf16.msra.mxu1 %v2348_v34  ;;  %2059 = vmatprep.mubr.msk.bf16.mxu1 %vm2233_vm1, %v2232_v1 }
 0xe4c   :  { %2057 = vmatprep.subr.bf16.mxu1 %v2232_v1 }
 0xe4f   :  { %2058 = vmatpush3.bf16.msra.mxu1 %v2372_v43 }
 0xe50   :  { %2071 = vmatprep.subr.bf16.mxu1 %v2232_v1 }
 0xf15   :  { %v1063_v44 = vpop.f32.mrb[28].mxu1 }
 0xf16   :  { %v2031_v45 = vpop.f32.mrb[29].mxu1 }
 0xf17   :  { %v1066_v46 = vpop.f32.mrb[30].mxu1 }
 0xf18   :  { %v2032_v32 = vpop.f32.mrb[31].mxu1 }
 0xf1a   :  { %v1109_v47 = vpop.f32.mrb[32].mxu0 }
 0xf1b   :  { %v1110_v49 = vadd.f32 %v1109_v47, %v1063_v44  ;;  %v2039_v51 = vpop.f32.mrb[33].mxu0  ;;  %v180_v47 = vadd.f32 %v2390_v48, %v2331_v11 }
 0xf1c   :  { %v1112_v55 = vpop.f32.mrb[34].mxu0 }
 0xf1d   :  { %v1115_v56 = vadd.f32 %v2415_v58, %v1110_v49  ;;  %v1174_v57 = vpop.f32.mrb[32].mxu1  ;;  %v2040_v59 = vpop.f32.mrb[35].mxu0 }
 0xf1e   :  { %v1180_v60 = vadd.f32 %v1174_v57, %v175_v53  ;;  %v2047_v61 = vpop.f32.mrb[33].mxu1 }
 0xf1f   :  { %v1116_v62 = vsub.f32 0.0, %v1115_v56  ;;  %v1177_v63 = vpop.f32.mrb[34].mxu1 }
 0xf20   :  { %v1181_v0 = vsub.f32 0.0, %v1180_v60  ;;  %v2048_v3 = vpop.f32.mrb[35].mxu1 }
 0xf21   :  { %v1117_v4 = vmul.f32 1.442695, %v1116_v62 }
 0xf22   :  { %v1182_v5 = vmul.f32 1.442695, %v1181_v0 }
 0xf23   :  { %2180 = vpow2.f32 %v1117_v4 }
 0xf24   :  { %2182 = vpow2.f32 %v1182_v5 }
 0xf2d   :  { %v2181_v6 = vpop.eup %2180 }
 0xf2e   :  { %v2183_v7 = vpop.eup %2182  ;;  %v1119_v8 = vadd.f32 1.0, %v2181_v6 }
 0xf2f   :  { %v1184_v10 = vadd.f32 1.0, %v2183_v7 }
 0xf30   :  { %2184 = vrcp.f32 %v1119_v8 }
 0xf31   :  { %2186 = vrcp.f32 %v1184_v10 }
 0xf3a   :  { %v2185_v54 = vpop.eup %2184 }
 0xf3b   :  { %v2187_v13 = vpop.eup %2186  ;;  %v1121_v14 = vmul.f32 2.0, %v2185_v54  ;;  %v1123_v21 = vmul.f32 %v2185_v54, %v2536_v26 }
 0xf3c   :  { %v1186_v16 = vmul.f32 2.0, %v2187_v13  ;;  %v1188_v22 = vmul.f32 %v2187_v13, %v2540_v29 }
 0xf3d   :  { %v1832_v15 = vadd.f32 -1.0, %v1121_v14 }
 0xf3e   :  { %v1834_v17 = vadd.f32 -1.0, %v1186_v16 }
 0xf3f   :  { %1125 = vrot.lane.b32.xlu0 %v1832_v15, %s2237_s18 }
 0xf40   :  { %1190 = vrot.lane.b32.xlu1 %v1834_v17, %s2235_s24 }
 0xfb1   :  { %v1126_v18 = vpop.permute.xlu0 %1125 }
 0xfb2   :  { %v1191_v50 = vpop.permute.xlu1 %1190  ;;  %v1128_v19 = vmul.f32 %v2185_v54, %v1126_v18 }
 0xfb3   :  { %v1193_v20 = vmul.f32 %v2187_v13, %v1191_v50 }
 0xfb4   :  { %1130 = vrot.lane.b32.xlu0 %v1128_v19, %s2238_s19 }
 0xfb5   :  { %1195 = vrot.lane.b32.xlu1 %v1193_v20, %s2236_s25 }
0x1026   :  { %v1131_v12 = vpop.permute.xlu0 %1130 }
0x1027   :  { %v1196_v23 = vpop.permute.xlu1 %1195  ;;  %v2575_v24 = vadd.f32 %v1131_v12, %v1123_v21 }
0x1028   :  { %v2577_v25 = vadd.f32 %v1196_v23, %v1188_v22 }
0x1029   :  { %2188 = vtanh.f32 %v2575_v24 }
0x102a   :  { %2190 = vtanh.f32 %v2577_v25 }
0x1033   :  { %v2189_v27 = vpop.eup %2188 }
0x1034   :  { %v2191_v28 = vpop.eup %2190  ;;  %1136 = vrot.lane.b32.xlu0 %v2189_v27, %s2239_s20 }
0x1035   :  { %1201 = vrot.lane.b32.xlu1 %v2191_v28, %s2235_s24  ;;  %v2227_v28 = vld [vmem:[%s2689_s1 + $0x8] sm:$0xff]  }
0x10a6   :  { %v1137_v30 = vpop.permute.xlu0 %1136 }
0x10a7   :  { %v1202_v26 = vpop.permute.xlu1 %1201  ;;  %v1139_v40 = vmul.f32 %v2185_v54, %v1137_v30  ;;  %v2228_v30 = vld [vmem:[%s2691_s3] sm:$0xff]  }
0x10a8   :  { %v1204_v29 = vmul.f32 %v2187_v13, %v1202_v26 }
0x10a9   :  { %v1206_v41 = vpack.c.bf16 %v1139_v40, %v1139_v40 }
0x10aa   :  { %v1205_v35 = vpack.c.bf16 %v1204_v29, %v1204_v29 }
0x10ab   :  { %1208 = vrot.lane.b32.xlu0 %v1206_v41, %s2240_s21 }
0x10ac   :  { %1254 = vrot.lane.b32.xlu1 %v1205_v35, %s2236_s25 }
0x111d   :  { %v1209_v33 = vpop.permute.xlu0 %1208 }
0x111e   :  { %v1255_v31 = vpop.permute.xlu1 %1254  ;;  %2052 = vmatmul.mubr.msk.bf16.vlgmr.msra.gmra.mrb[36].mxu0 %vm268_vm4, %v1209_v33 }
0x111f   :  { %2060 = vmatmul.mubr.msk.bf16.vlgmr.msra.gmra.mrb[36].mxu1 %vm198_vm3, %v1255_v31  ;;  %2064 = vmatpush3.bf16.msra.mxu0 %v2298_v2 }
0x1120   :  { %2065 = vmatprep.subr.bf16.mxu0 %v2232_v1  ;;  %2067 = vmatprep.mubr.msk.bf16.mxu0 %vm2233_vm1, %v2232_v1 }
0x1121   :  { %2072 = vmatpush3.bf16.msra.mxu1 %v2356_v37  ;;  %2073 = vmatprep.mubr.msk.bf16.mxu1 %vm2233_vm1, %v2232_v1 }
0x1122   :  { %2085 = vmatprep.subr.bf16.mxu1 %v2232_v1 }
0x1123   :  { %2066 = vmatpush3.bf16.msra.mxu0 %v2317_v9 }
0x1124   :  { %2077 = vmatprep.subr.bf16.mxu0 %v2232_v1 }
0x1126   :  { %2068 = vmatmul.mubr.msk.bf16.vlgmr.msra.gmra.mrb[40].mxu0 %vm198_vm3, %v1255_v31 }
0x1127   :  { %2078 = vmatpush3.bf16.msra.mxu0 %v2348_v34  ;;  %2081 = vmatprep.mubr.msk.bf16.mxu0 %vm2233_vm1, %v2232_v1 }
0x1128   :  { %2079 = vmatprep.subr.bf16.mxu0 %v2232_v1 }
0x112b   :  { %2080 = vmatpush3.bf16.msra.mxu0 %v2372_v43 }
0x112c   :  { %2093 = vmatprep.subr.bf16.mxu0 %v2232_v1 }
0x11f1   :  { %v1247_v2 = vpop.f32.mrb[36].mxu0 }
0x11f2   :  { %v1293_v38 = vpop.f32.mrb[36].mxu1  ;;  %v2053_v39 = vpop.f32.mrb[37].mxu0 }
0x11f3   :  { %v1294_v36 = vadd.f32 %v1293_v38, %v1247_v2  ;;  %v2061_v9 = vpop.f32.mrb[37].mxu1  ;;  %v1250_v42 = vpop.f32.mrb[38].mxu0  ;;  %v2230_v2 = vld [vmem:[%s2690_s2] ss:$0 sm:$0xff] }
0x11f4   :  { %v1296_v44 = vpop.f32.mrb[38].mxu1  ;;  %v2054_v45 = vpop.f32.mrb[39].mxu0  ;;  %v183_v38 = vadd.f32 %v2230_v2, %v2394_v52 }
0x11f5   :  { %v1299_v46 = vadd.f32 %v2415_v58, %v1294_v36  ;;  %v2062_v34 = vpop.f32.mrb[39].mxu1 }
0x11f7   :  { %v1300_v32 = vsub.f32 0.0, %v1299_v46 }
0x11f9   :  { %v1301_v49 = vmul.f32 1.442695, %v1300_v32  ;;  %v1358_v51 = vpop.f32.mrb[40].mxu0 }
0x11fa   :  { %v1364_v43 = vadd.f32 %v1358_v51, %v180_v47  ;;  %v2069_v53 = vpop.f32.mrb[41].mxu0 }
0x11fb   :  { %2192 = vpow2.f32 %v1301_v49  ;;  %v1361_v55 = vpop.f32.mrb[42].mxu0 }
0x11fc   :  { %v1365_v56 = vsub.f32 0.0, %v1364_v43  ;;  %v2070_v57 = vpop.f32.mrb[43].mxu0 }
0x11fe   :  { %v1366_v59 = vmul.f32 1.442695, %v1365_v56 }
0x1200   :  { %2194 = vpow2.f32 %v1366_v59 }
0x1205   :  { %v2193_v60 = vpop.eup %2192 }
0x1206   :  { %v1303_v61 = vadd.f32 1.0, %v2193_v60 }
0x1208   :  { %2196 = vrcp.f32 %v1303_v61 }
0x120a   :  { %v2195_v62 = vpop.eup %2194 }
0x120b   :  { %v1368_v63 = vadd.f32 1.0, %v2195_v62 }
0x120d   :  { %2198 = vrcp.f32 %v1368_v63 }
0x1212   :  { %v2197_v0 = vpop.eup %2196 }
0x1213   :  { %v1305_v3 = vmul.f32 2.0, %v2197_v0  ;;  %v1307_v54 = vmul.f32 %v2197_v0, %v2575_v24 }
0x1215   :  { %v1837_v4 = vadd.f32 -1.0, %v1305_v3 }
0x1217   :  { %v2199_v11 = vpop.eup %2198  ;;  %1309 = vrot.lane.b32.xlu0 %v1837_v4, %s2237_s18 }
0x1218   :  { %v1370_v48 = vmul.f32 2.0, %v2199_v11  ;;  %v1372_v16 = vmul.f32 %v2199_v11, %v2577_v25  ;;  %v2226_v25 = vld [vmem:[%s2689_s1] sm:$0xff]  }
0x121a   :  { %v1839_v5 = vadd.f32 -1.0, %v1370_v48 }
0x121c   :  { %1374 = vrot.lane.b32.xlu1 %v1839_v5, %s2235_s24 }
0x1289   :  { %v1310_v6 = vpop.permute.xlu0 %1309 }
0x128a   :  { %v1312_v7 = vmul.f32 %v2197_v0, %v1310_v6 }
0x128c   :  { %1314 = vrot.lane.b32.xlu0 %v1312_v7, %s2238_s19 }
0x128e   :  { %v1375_v8 = vpop.permute.xlu1 %1374 }
0x128f   :  { %v1377_v10 = vmul.f32 %v2199_v11, %v1375_v8 }
0x1291   :  { %1379 = vrot.lane.b32.xlu1 %v1377_v10, %s2236_s25 }
0x12fe   :  { %v1315_v13 = vpop.permute.xlu0 %1314 }
0x12ff   :  { %v2612_v14 = vadd.f32 %v1315_v13, %v1307_v54 }
0x1301   :  { %2200 = vtanh.f32 %v2612_v14 }
0x1303   :  { %v1380_v15 = vpop.permute.xlu1 %1379 }
0x1304   :  { %v2616_v17 = vadd.f32 %v1380_v15, %v1372_v16 }
0x1306   :  { %2202 = vtanh.f32 %v2616_v17 }
0x130b   :  { %v2201_v18 = vpop.eup %2200 }
0x130c   :  { %1320 = vrot.lane.b32.xlu0 %v2201_v18, %s2239_s20 }
0x1310   :  { %v2203_v50 = vpop.eup %2202 }
0x1311   :  { %1385 = vrot.lane.b32.xlu1 %v2203_v50, %s2235_s24 }
0x137e   :  { %v1321_v19 = vpop.permute.xlu0 %1320 }
0x137f   :  { %v1323_v20 = vmul.f32 %v2197_v0, %v1321_v19 }
0x1381   :  { %v1390_v21 = vpack.c.bf16 %v1323_v20, %v1323_v20 }
0x1383   :  { %1392 = vrot.lane.b32.xlu0 %v1390_v21, %s2240_s21  ;;  %v1386_v22 = vpop.permute.xlu1 %1385 }
0x1384   :  { %v1388_v12 = vmul.f32 %v2199_v11, %v1386_v22 }
0x1386   :  { %v1389_v23 = vpack.c.bf16 %v1388_v12, %v1388_v12 }
0x1388   :  { %1438 = vrot.lane.b32.xlu1 %v1389_v23, %s2236_s25 }
0x13f5   :  { %v1393_v24 = vpop.permute.xlu0 %1392 }
0x13f6   :  { %2074 = vmatmul.mubr.msk.bf16.vlgmr.msra.gmra.mrb[40].mxu1 %vm268_vm4, %v1393_v24 }
0x13f7   :  { %2086 = vmatpush3.bf16.msra.mxu1 %v2226_v25  ;;  %2089 = vmatprep.mubr.msk.bf16.mxu1 %vm2233_vm1, %v2232_v1 }
0x13f8   :  { %2087 = vmatprep.subr.bf16.mxu1 %v2232_v1 }
0x13fa   :  { %v1439_v27 = vpop.permute.xlu1 %1438 }
0x13fb   :  { %2088 = vmatpush3.bf16.msra.mxu1 %v2227_v28  ;;  %2082 = vmatmul.mubr.msk.bf16.vlgmr.msra.gmra.mrb[44].mxu0 %vm198_vm3, %v1439_v27 }
0x13fc   :  { %2099 = vmatprep.subr.bf16.mxu1 %v2232_v1  ;;  %2094 = vmatpush3.bf16.msra.mxu0 %v2356_v37  ;;  %v2229_v37 = vld [vmem:[%s2691_s3 + $0x8] sm:$0xff]  }
0x13fd   :  { %2095 = vmatprep.mubr.msk.bf16.mxu0 %vm2233_vm1, %v2232_v1  ;;  %2107 = vmatprep.subr.mxu0 %v2232_v1 }
0x13fe   :  { %2090 = vmatmul.mubr.msk.bf16.vlgmr.msra.gmra.mrb[44].mxu1 %vm198_vm3, %v1439_v27  ;;  %v2231_v27 = vld [vmem:[%s2693_s5] ss:$0 sm:$0xff] }
0x13ff   :  { %2100 = vmatpush3.bf16.msra.mxu1 %v2228_v30  ;;  %2103 = vmatprep.mubr.msk.bf16.mxu1 %vm2233_vm1, %v2232_v1 }
0x1400   :  { %2101 = vmatprep.subr.bf16.mxu1 %v2232_v1 }
0x1403   :  { %2102 = vmatpush3.bf16.msra.mxu1 %v2229_v37 }
0x14c9   :  { %v1431_v26 = vpop.f32.mrb[40].mxu1 }
0x14ca   :  { %v2075_v40 = vpop.f32.mrb[41].mxu1 }
0x14cb   :  { %v1434_v29 = vpop.f32.mrb[42].mxu1 }
0x14cc   :  { %v2076_v41 = vpop.f32.mrb[43].mxu1 }
0x14ce   :  { %v1477_v35 = vpop.f32.mrb[44].mxu0 }
0x14cf   :  { %v1478_v33 = vadd.f32 %v1477_v35, %v1431_v26  ;;  %v2083_v31 = vpop.f32.mrb[45].mxu0 }
0x14d0   :  { %v1480_v39 = vpop.f32.mrb[46].mxu0 }
0x14d1   :  { %v1483_v36 = vadd.f32 %v2415_v58, %v1478_v33  ;;  %v1542_v9 = vpop.f32.mrb[44].mxu1  ;;  %v2084_v42 = vpop.f32.mrb[47].mxu0 }
0x14d2   :  { %v1548_v44 = vadd.f32 %v1542_v9, %v183_v38  ;;  %v2091_v45 = vpop.f32.mrb[45].mxu1 }
0x14d3   :  { %v1484_v46 = vsub.f32 0.0, %v1483_v36  ;;  %v1545_v34 = vpop.f32.mrb[46].mxu1  ;;  %v1692_v36 = vld [vmem:[%s2694_s6] sm:$0xff] }
0x14d4   :  { %v1549_v32 = vsub.f32 0.0, %v1548_v44  ;;  %v2092_v47 = vpop.f32.mrb[47].mxu1 }
0x14d5   :  { %v1485_v49 = vmul.f32 1.442695, %v1484_v46  ;;  %v1848_v46 = vld [vmem:[%s2695_s7] ss:$0 sm:$0xff] }
0x14d6   :  { %v1550_v51 = vmul.f32 1.442695, %v1549_v32 }
0x14d7   :  { %2204 = vpow2.f32 %v1485_v49 }
0x14d8   :  { %2206 = vpow2.f32 %v1550_v51 }
0x14e1   :  { %v2205_v43 = vpop.eup %2204 }
0x14e2   :  { %v2207_v53 = vpop.eup %2206  ;;  %v1487_v55 = vadd.f32 1.0, %v2205_v43 }
0x14e3   :  { %v1552_v56 = vadd.f32 1.0, %v2207_v53 }
0x14e4   :  { %2208 = vrcp.f32 %v1487_v55 }
0x14e5   :  { %2210 = vrcp.f32 %v1552_v56 }
0x14ee   :  { %v2209_v52 = vpop.eup %2208 }
0x14ef   :  { %v2211_v58 = vpop.eup %2210  ;;  %v1489_v57 = vmul.f32 2.0, %v2209_v52  ;;  %v1491_v4 = vmul.f32 %v2209_v52, %v2612_v14 }
0x14f0   :  { %v1554_v59 = vmul.f32 2.0, %v2211_v58  ;;  %v1556_v11 = vmul.f32 %v2211_v58, %v2616_v17 }
0x14f1   :  { %v1842_v60 = vadd.f32 -1.0, %v1489_v57 }
0x14f2   :  { %v1844_v61 = vadd.f32 -1.0, %v1554_v59 }
0x14f3   :  { %1493 = vrot.lane.b32.xlu0 %v1842_v60, %s2237_s18 }
0x14f4   :  { %1558 = vrot.lane.b32.xlu1 %v1844_v61, %s2235_s24 }
0x1565   :  { %v1494_v62 = vpop.permute.xlu0 %1493 }
0x1566   :  { %v1559_v63 = vpop.permute.xlu1 %1558  ;;  %v1496_v0 = vmul.f32 %v2209_v52, %v1494_v62 }
0x1567   :  { %v1561_v3 = vmul.f32 %v2211_v58, %v1559_v63 }
0x1568   :  { %1498 = vrot.lane.b32.xlu0 %v1496_v0, %s2238_s19 }
0x1569   :  { %1563 = vrot.lane.b32.xlu1 %v1561_v3, %s2236_s25 }
0x15da   :  { %v1499_v48 = vpop.permute.xlu0 %1498 }
0x15db   :  { %v1564_v5 = vpop.permute.xlu1 %1563  ;;  %v1501_v6 = vadd.f32 %v1499_v48, %v1491_v4 }
0x15dc   :  { %v1566_v7 = vadd.f32 %v1564_v5, %v1556_v11 }
0x15dd   :  { %2212 = vtanh.f32 %v1501_v6 }
0x15de   :  { %2214 = vtanh.f32 %v1566_v7 }
0x15e7   :  { %v2213_v8 = vpop.eup %2212 }
0x15e8   :  { %v2215_v10 = vpop.eup %2214  ;;  %1504 = vrot.lane.b32.xlu0 %v2213_v8, %s2239_s20 }
0x15e9   :  { %1569 = vrot.lane.b32.xlu1 %v2215_v10, %s2235_s24 }
0x165a   :  { %v1505_v54 = vpop.permute.xlu0 %1504 }
0x165b   :  { %v1570_v13 = vpop.permute.xlu1 %1569  ;;  %v1507_v16 = vmul.f32 %v2209_v52, %v1505_v54 }
0x165c   :  { %v1572_v15 = vmul.f32 %v2211_v58, %v1570_v13 }
0x165d   :  { %v1574_v18 = vpack.c.bf16 %v1507_v16, %v1507_v16 }
0x165e   :  { %v1573_v14 = vpack.c.bf16 %v1572_v15, %v1572_v15 }
0x165f   :  { %1576 = vrot.lane.b32.xlu0 %v1574_v18, %s2240_s21 }
0x1660   :  { %1622 = vrot.lane.b32.xlu1 %v1573_v14, %s2236_s25 }
0x16d1   :  { %v1577_v17 = vpop.permute.xlu0 %1576 }
0x16d2   :  { %v1623_v50 = vpop.permute.xlu1 %1622  ;;  %2096 = vmatmul.mubr.msk.bf16.vlgmr.msra.gmra.mrb[48].mxu0 %vm268_vm4, %v1577_v17 }
0x16d3   :  { %2104 = vmatmul.mubr.msk.bf16.vlgmr.msra.gmra.mrb[48].mxu1 %vm198_vm3, %v1623_v50  ;;  %2109 = vmatprep.mubr.msk.f32.mxu0 %vm2233_vm1, %v2232_v1 }
0x16d4   :  { %2108 = vmatpush3.msra.mxu0 %v1692_v36 }
0x17a5   :  { %v1615_v19 = vpop.f32.mrb[48].mxu0 }
0x17a6   :  { %v1661_v20 = vpop.f32.mrb[48].mxu1  ;;  %v2097_v21 = vpop.f32.mrb[49].mxu0 }
0x17a7   :  { %v1662_v22 = vadd.f32 %v1661_v20, %v1615_v19  ;;  %v2105_v12 = vpop.f32.mrb[49].mxu1  ;;  %v1618_v23 = vpop.f32.mrb[50].mxu0 }
0x17a8   :  { %v1664_v24 = vpop.f32.mrb[50].mxu1  ;;  %v2098_v25 = vpop.f32.mrb[51].mxu0 }
0x17a9   :  { %v1667_v28 = vadd.f32 %v2231_v27, %v1662_v22  ;;  %v2106_v30 = vpop.f32.mrb[51].mxu1 }
0x17ab   :  { %v1668_v37 = vsub.f32 0.0, %v1667_v28 }
0x17ad   :  { %v1669_v26 = vmul.f32 1.442695, %v1668_v37 }
0x17af   :  { %2216 = vpow2.f32 %v1669_v26 }
0x17b9   :  { %v2217_v40 = vpop.eup %2216 }
0x17ba   :  { %v1671_v29 = vadd.f32 1.0, %v2217_v40 }
0x17bc   :  { %2218 = vrcp.f32 %v1671_v29 }
0x17c6   :  { %v2219_v1 = vpop.eup %2218 }
0x17c7   :  { %v1673_v41 = vmul.f32 2.0, %v2219_v1  ;;  %v1675_v2 = vmul.f32 %v2219_v1, %v1501_v6 }
0x17c9   :  { %v1847_v35 = vadd.f32 -1.0, %v1673_v41 }
0x17cb   :  { %1677 = vrot.lane.b32.xlu0 %v1847_v35, %s2237_s18 }
0x183d   :  { %v1678_v33 = vpop.permute.xlu0 %1677 }
0x183e   :  { %v1680_v31 = vmul.f32 %v2219_v1, %v1678_v33 }
0x1840   :  { %1682 = vrot.lane.b32.xlu1 %v1680_v31, %s2238_s19 }
0x18b2   :  { %v1683_v38 = vpop.permute.xlu1 %1682 }
0x18b3   :  { %v1685_v39 = vadd.f32 %v1683_v38, %v1675_v2 }
0x18b5   :  { %2220 = vtanh.f32 %v1685_v39 }
0x18bf   :  { %v2221_v9 = vpop.eup %2220 }
0x18c0   :  { %1688 = vrot.lane.b32.xlu0 %v2221_v9, %s2239_s20 }
0x1932   :  { %v1689_v42 = vpop.permute.xlu0 %1688 }
0x1933   :  { %v1691_v44 = vmul.f32 %v2219_v1, %v1689_v42 }
0x1935   :  { %1701 = vrot.lane.b32.xlu1 %v1691_v44, %s2240_s21 }
0x19a7   :  { %v1702_v45 = vpop.permute.xlu1 %1701 }
0x19a8   :  { %2110 = vmatmul.mubr.msk.f32.vlgmr.msra.gmra.mrb[52].mxu0 %vm268_vm4, %v1702_v45 }
0x1a7b   :  { %v1771_v34 = vpop.f32.mrb[52].mxu0 }
0x1a7c   :  { %v1772_v32 = vadd.f32 %v1848_v46, %v1771_v34  ;;  %v2111_v47 = vpop.f32.mrb[53].mxu0 }
0x1a7e   :  { %v1776_v49 = vsel %vm1775_vm5, %v1772_v32, -inf }
0x1a7f   :  { %1777 = vmax.xlane.f32.xlu0 %v1776_v49 }
0x1b0c   :  { %v1778_v51 = vpop.xlane.xlu0 %1777 }
0x1b0d   :  { %v1779_v43 = vsub.f32 %v1772_v32, %v1778_v51 }
0x1b0f   :  { %v1780_v53 = vmul.f32 1.442695, %v1779_v43 }
0x1b11   :  { %2222 = vpow2.f32 %v1780_v53 }
0x1b1b   :  { %v2223_v55 = vpop.eup %2222 }
0x1b1c   :  { %v1782_v56 = vsel %vm1775_vm5, %v2223_v55, 0.0 }
0x1b1d   :  { %1783 = vadd.xlane.f32.xlu1 %v1782_v56 }
0x1baa   :  { %v1784_v52 = vpop.xlane.xlu1 %1783 }
0x1bab   :  { %2224 = vrcp.f32 %v1784_v52 }
0x1bb5   :  { %v2225_v58 = vpop.eup %2224 }
0x1bb6   :  { %v1786_v57 = vmul.f32 %v2225_v58, %v2223_v55 }
0x1bb8   :  { %1787 = vst.msk [vmem:[%s2697_s9] sm:$0xff] %vm1775_vm5, %v1786_v57 }

</bundles_post_ra>
